<compile_context>
chip_gen: v5e
topology: v5e:2x2
jax: 0.10.0
libtpu: 0.0.40
codegen_flags: <defaults>
</compile_context>

<pallas_src>
import math

import jax
import jax.numpy as jnp
import numpy as np
from jax import lax
from jax.experimental import pallas as pl
from jax.experimental.pallas import tpu as pltpu

# ----- small synthetic shapes consistent with the CLIP text tower -----
B = 2            # batch
T = 8            # max_length (77 in the real module; pad to 128 at real size)
D = 128          # transformer width (1024 for ViT-H-14) -- lane-dense last dim
H = 4            # attention heads (16 for ViT-H-14)
HD = D // H      # head dim
FF = 4 * D       # MLP hidden
VOCAB = 64       # vocab size (49408 in open_clip); table stays in HBM
N_LAYERS = 2     # transformer depth (24 for ViT-H-14)
EPS = 1e-5       # LayerNorm eps
NEG_INF = -1e30  # additive causal-mask fill (open_clip uses -inf)
VMEM_LIMIT = 32 * 1024 * 1024


# --------------------------- shared math helpers ---------------------------
def _layer_norm(x, w, b):
    mu = jnp.mean(x, axis=-1, keepdims=True)
    var = jnp.mean(jnp.square(x - mu), axis=-1, keepdims=True)
    return (x - mu) * lax.rsqrt(var + EPS) * w + b


def _gelu(x):
    # exact (erf) GELU, matching torch nn.GELU()
    return 0.5 * x * (1.0 + lax.erf(x * (1.0 / math.sqrt(2.0))))


def _causal_bias():
    i = jnp.arange(T)[:, None]
    j = jnp.arange(T)[None, :]
    return jnp.where(j <= i, 0.0, NEG_INF).astype(jnp.float32)      # [T, T] additive


# ------------------------------ embedding kernel ------------------------------
def embed_kernel(tok_ref, pos_ref, tok_emb_hbm, o_ref, gbuf, sem):
    """DMA row-gather of token embeddings from HBM + positional add.

    tok_ref: SMEM [B*T] int32, pos_ref: VMEM [B*T, D] (pre-tiled positional emb),
    tok_emb_hbm: HBM [VOCAB, D] (memory_space=pl.ANY), o_ref: VMEM [B*T, D].
    """
    # issue all row DMAs first so they overlap, then wait on each.
    for i in range(B * T):
        pltpu.make_async_copy(tok_emb_hbm.at[pl.ds(tok_ref[i], 1)],
                              gbuf.at[pl.ds(i, 1)],
                              sem.at[i]).start()
    for i in range(B * T):
        pltpu.make_async_copy(tok_emb_hbm.at[pl.ds(0, 1)],        # size-only for wait
                              gbuf.at[pl.ds(i, 1)],
                              sem.at[i]).wait()
    o_ref[...] = gbuf[...] + pos_ref[...]


def embed(tokens, tok_emb, pos_emb):
    pos_bt = jnp.tile(pos_emb, (B, 1))                             # [B*T, D]
    out = pl.pallas_call(
        embed_kernel,
        out_shape=jax.ShapeDtypeStruct((B * T, D), jnp.float32),
        in_specs=[pl.BlockSpec(memory_space=pltpu.MemorySpace.SMEM),   # token ids
                  pl.BlockSpec(memory_space=pltpu.MemorySpace.VMEM),   # positional
                  pl.BlockSpec(memory_space=pl.ANY)],                  # HBM table
        out_specs=pl.BlockSpec(memory_space=pltpu.MemorySpace.VMEM),
        scratch_shapes=[pltpu.VMEM((B * T, D), jnp.float32),
                        pltpu.SemaphoreType.DMA((B * T,))],
        compiler_params=pltpu.CompilerParams(vmem_limit_bytes=VMEM_LIMIT),
    )(tokens.reshape(-1).astype(jnp.int32), pos_bt, tok_emb)
    return out.reshape(B, T, D)


# --------------------------- fused transformer kernel ---------------------------
def transformer_kernel(x0_ref, mask_ref,
                       ln1_w_ref, ln1_b_ref, wqkv_ref, bqkv_ref, wo_ref, bo_ref,
                       ln2_w_ref, ln2_b_ref, wfc_ref, bfc_ref, wproj_ref, bproj_ref,
                       lnf_w_ref, lnf_b_ref,
                       o_ref, x_scr):
    """grid = (batch, layer).  One ResidualAttentionBlock per step; residual x is a
    VMEM scratch carried across the layer axis; ln_final fused into the last step."""
    l = pl.program_id(1)

    @pl.when(l == 0)
    def _():
        x_scr[...] = x0_ref[...]

    x = x_scr[...]                                                 # [1, T, D] f32

    # ---------------- attention branch (pre-LN, causal) ----------------
    h = _layer_norm(x, ln1_w_ref[0], ln1_b_ref[0]).astype(jnp.bfloat16)
    # torch Linear semantics: y = x @ W^T + b ; in_proj_weight is [3D, D]
    qkv = jnp.einsum("btd,ed->bte", h, wqkv_ref[0],
                     preferred_element_type=jnp.float32) + bqkv_ref[0]   # [1, T, 3D] f32

    scale = 1.0 / math.sqrt(HD)
    q = (qkv[..., 0:D] * scale).astype(jnp.bfloat16)               # scale folded into q
    k = qkv[..., D:2 * D].astype(jnp.bfloat16)
    v = qkv[..., 2 * D:3 * D].astype(jnp.bfloat16)
    bias = mask_ref[...][None]                                     # [1, T, T] additive mask

    wo_all = wo_ref[0]                                             # [H, D, HD] bf16
    attn = jnp.zeros((1, T, D), jnp.float32)
    # Heads unrolled statically; each head folds straight into the out-projection,
    # so no lane-axis concatenate / relayout is needed.
    # TODO(synk): at real size (H=16, T=128) fold heads into the grid / a single
    # batched contraction instead of the static unroll.
    for hh in range(H):
        sl = slice(hh * HD, (hh + 1) * HD)
        s = jnp.einsum("bqd,bkd->bqk", q[..., sl], k[..., sl],
                       preferred_element_type=jnp.float32) + bias  # [1, T, T] f32
        s = s - jnp.max(s, axis=-1, keepdims=True)
        p = jnp.exp(s)
        p = p * pl.reciprocal(jnp.sum(p, axis=-1, keepdims=True), approx=True)
        ctx = jnp.einsum("bqk,bkd->bqd", p.astype(jnp.bfloat16), v[..., sl],
                         preferred_element_type=jnp.float32)       # [1, T, HD]
        attn = attn + jnp.einsum("bqd,ed->bqe", ctx.astype(jnp.bfloat16), wo_all[hh],
                                 preferred_element_type=jnp.float32)
    x = x + attn + bo_ref[0]

    # ---------------- MLP branch (pre-LN) ----------------
    h2 = _layer_norm(x, ln2_w_ref[0], ln2_b_ref[0]).astype(jnp.bfloat16)
    fc = jnp.einsum("btd,fd->btf", h2, wfc_ref[0],
                    preferred_element_type=jnp.float32) + bfc_ref[0]     # [1, T, 4D]
    g = _gelu(fc).astype(jnp.bfloat16)
    proj = jnp.einsum("btf,df->btd", g, wproj_ref[0],
                      preferred_element_type=jnp.float32) + bproj_ref[0]
    x = x + proj

    x_scr[...] = x

    @pl.when(l == pl.num_programs(1) - 1)
    def _():
        o_ref[...] = _layer_norm(x, lnf_w_ref[...], lnf_b_ref[...])


def transformer(x, stacked, lnf_w, lnf_b, mask, n_layers_used):
    w = {k: v[:n_layers_used] for k, v in stacked.items()}

    def layer_spec(arr):
        n_trailing = arr.ndim - 1
        return pl.BlockSpec((1,) + arr.shape[1:],
                            lambda b, l, _n=n_trailing: (l,) + (0,) * _n)

    in_specs = [
        pl.BlockSpec((1, T, D), lambda b, l: (b, 0, 0)),           # x0 (per batch row)
        pl.BlockSpec((T, T), lambda b, l: (0, 0)),                 # causal mask (hoisted)
        layer_spec(w["ln1_w"]), layer_spec(w["ln1_b"]),
        layer_spec(w["w_qkv"]), layer_spec(w["b_qkv"]),
        layer_spec(w["w_out_heads"]), layer_spec(w["b_out"]),
        layer_spec(w["ln2_w"]), layer_spec(w["ln2_b"]),
        layer_spec(w["w_fc"]), layer_spec(w["b_fc"]),
        layer_spec(w["w_proj"]), layer_spec(w["b_proj"]),
        pl.BlockSpec((1, D), lambda b, l: (0, 0)),                 # ln_final weight
        pl.BlockSpec((1, D), lambda b, l: (0, 0)),                 # ln_final bias
    ]
    return pl.pallas_call(
        transformer_kernel,
        out_shape=jax.ShapeDtypeStruct((B, T, D), jnp.float32),
        grid_spec=pltpu.PrefetchScalarGridSpec(
            num_scalar_prefetch=0,
            grid=(B, n_layers_used),
            in_specs=in_specs,
            out_specs=pl.BlockSpec((1, T, D), lambda b, l: (b, 0, 0)),
            scratch_shapes=[pltpu.VMEM((1, T, D), jnp.float32)]),
        compiler_params=pltpu.CompilerParams(
            dimension_semantics=("parallel", "arbitrary"),
            vmem_limit_bytes=VMEM_LIMIT),
    )(x, mask,
      w["ln1_w"], w["ln1_b"], w["w_qkv"], w["b_qkv"],
      w["w_out_heads"], w["b_out"], w["ln2_w"], w["ln2_b"],
      w["w_fc"], w["b_fc"], w["w_proj"], w["b_proj"],
      lnf_w, lnf_b)


# ------------------------- parameter packing (host side) -------------------------
def prepare_params(params):
    """Stack per-layer weights along a leading L axis, cast matmul weights to bf16,
    and pre-split the out-projection per head ([L, H, D, HD]) so the kernel never
    slices / concatenates along the lane axis for the output projection."""
    blocks = params["blocks"]
    bf16 = jnp.bfloat16

    def stack(fn, dtype=None):
        a = jnp.stack([fn(blk) for blk in blocks], axis=0)
        return a.astype(dtype) if dtype is not None else a

    return {
        "ln1_w": stack(lambda b: b["ln1_w"][None, :]),                            # [L,1,D]
        "ln1_b": stack(lambda b: b["ln1_b"][None, :]),
        "w_qkv": stack(lambda b: b["w_qkv"], bf16),                               # [L,3D,D]
        "b_qkv": stack(lambda b: b["b_qkv"][None, :]),                            # [L,1,3D]
        "w_out_heads": stack(
            lambda b: b["w_out"].reshape(D, H, HD).transpose(1, 0, 2), bf16),     # [L,H,D,HD]
        "b_out": stack(lambda b: b["b_out"][None, :]),                            # [L,1,D]
        "ln2_w": stack(lambda b: b["ln2_w"][None, :]),
        "ln2_b": stack(lambda b: b["ln2_b"][None, :]),
        "w_fc": stack(lambda b: b["w_fc"], bf16),                                 # [L,FF,D]
        "b_fc": stack(lambda b: b["b_fc"][None, :]),                              # [L,1,FF]
        "w_proj": stack(lambda b: b["w_proj"], bf16),                             # [L,D,FF]
        "b_proj": stack(lambda b: b["b_proj"][None, :]),                          # [L,1,D]
    }


def frozen_open_clip_embedder(tokens, params, layer="last"):
    """Pallas implementation of FrozenOpenCLIPEmbedder.encode_with_transformer."""
    assert layer in ("last", "penultimate")
    layer_idx = 0 if layer == "last" else 1
    n_used = N_LAYERS - layer_idx
    x = embed(tokens, params["token_embedding"], params["positional_embedding"])
    stacked = prepare_params(params)
    lnf_w = params["ln_final_w"][None, :]
    lnf_b = params["ln_final_b"][None, :]
    return transformer(x, stacked, lnf_w, lnf_b, _causal_bias(), n_used)


# ------------------------------ reference (plain JAX) ------------------------------
def reference(tokens, params, layer="last"):
    """Mirrors the kernel's bf16-weight / f32-accumulate numerics in plain JAX."""
    layer_idx = 0 if layer == "last" else 1
    n_used = N_LAYERS - layer_idx
    sp = prepare_params(params)
    bias = _causal_bias()[None]
    scale = 1.0 / math.sqrt(HD)

    x = params["token_embedding"][tokens] + params["positional_embedding"][None]
    for l in range(n_used):
        h = _layer_norm(x, sp["ln1_w"][l, 0], sp["ln1_b"][l, 0]).astype(jnp.bfloat16)
        qkv = jnp.einsum("btd,ed->bte", h, sp["w_qkv"][l],
                         preferred_element_type=jnp.float32) + sp["b_qkv"][l, 0]
        q = (qkv[..., 0:D] * scale).astype(jnp.bfloat16)
        k = qkv[..., D:2 * D].astype(jnp.bfloat16)
        v = qkv[..., 2 * D:3 * D].astype(jnp.bfloat16)
        attn = jnp.zeros((B, T, D), jnp.float32)
        for hh in range(H):
            sl = slice(hh * HD, (hh + 1) * HD)
            s = jnp.einsum("bqd,bkd->bqk", q[..., sl], k[..., sl],
                           preferred_element_type=jnp.float32) + bias
            p = jax.nn.softmax(s, axis=-1)
            ctx = jnp.einsum("bqk,bkd->bqd", p.astype(jnp.bfloat16), v[..., sl],
                             preferred_element_type=jnp.float32)
            attn = attn + jnp.einsum("bqd,ed->bqe", ctx.astype(jnp.bfloat16),
                                     sp["w_out_heads"][l, hh],
                                     preferred_element_type=jnp.float32)
        x = x + attn + sp["b_out"][l, 0]
        h2 = _layer_norm(x, sp["ln2_w"][l, 0], sp["ln2_b"][l, 0]).astype(jnp.bfloat16)
        fc = jnp.einsum("btd,fd->btf", h2, sp["w_fc"][l],
                        preferred_element_type=jnp.float32) + sp["b_fc"][l, 0]
        g = _gelu(fc).astype(jnp.bfloat16)
        proj = jnp.einsum("btf,df->btd", g, sp["w_proj"][l],
                          preferred_element_type=jnp.float32) + sp["b_proj"][l, 0]
        x = x + proj
    return _layer_norm(x, params["ln_final_w"], params["ln_final_b"])


# ------------------------------ deterministic params ------------------------------
def init_params(key):
    ks = jax.random.split(key, 2 + N_LAYERS)

    def rnd(k, shape, scale=0.02):
        return (scale * jax.random.normal(k, shape)).astype(jnp.float32)

    params = {
        "token_embedding": rnd(ks[0], (VOCAB, D)),
        "positional_embedding": rnd(ks[1], (T, D)),
        "ln_final_w": jnp.ones((D,), jnp.float32),
        "ln_final_b": jnp.zeros((D,), jnp.float32),
        "blocks": [],
    }
    for i in range(N_LAYERS):
        bk = jax.random.split(ks[2 + i], 8)
        params["blocks"].append({
            "ln1_w": jnp.ones((D,), jnp.float32),
            "ln1_b": jnp.zeros((D,), jnp.float32),
            "w_qkv": rnd(bk[0], (3 * D, D)),   # torch in_proj_weight [3D, D]
            "b_qkv": rnd(bk[1], (3 * D,)),
            "w_out": rnd(bk[2], (D, D)),       # torch out_proj.weight [D, D]
            "b_out": rnd(bk[3], (D,)),
            "ln2_w": jnp.ones((D,), jnp.float32),
            "ln2_b": jnp.zeros((D,), jnp.float32),
            "w_fc": rnd(bk[4], (FF, D)),       # mlp.c_fc.weight [4D, D]
            "b_fc": rnd(bk[5], (FF,)),
            "w_proj": rnd(bk[6], (D, FF)),     # mlp.c_proj.weight [D, 4D]
            "b_proj": rnd(bk[7], (D,)),
        })
    return params


if __name__ == "__main__":
    key = jax.random.PRNGKey(0)
    pkey, tkey = jax.random.split(key)
    params = init_params(pkey)
    tokens = jax.random.randint(tkey, (B, T), 0, VOCAB, dtype=jnp.int32)

    out = frozen_open_clip_embedder(tokens, params, layer="last")
    out = jax.block_until_ready(out)

    ref = reference(tokens, params, layer="last")
    assert out.shape == (B, T, D) and out.dtype == jnp.float32
    # tolerance covers bf16 MXU inputs + approximate EUP reciprocal vs exact division
    np.testing.assert_allclose(np.asarray(out), np.asarray(ref), atol=1e-2, rtol=1e-2)
    print("KERNEL_OK")
</pallas_src>

<mosaic_0001>
module attributes {stable_mosaic.version = 11 : i64} {
  func.func @embed_kernel(%arg0: memref<16xi32, #tpu.memory_space<smem>>, %arg1: memref<16x128xf32, #tpu.memory_space<vmem>>, %arg2: memref<64x128xf32, #tpu.memory_space<any>>, %arg3: memref<16x128xf32, #tpu.memory_space<vmem>>, %arg4: memref<16x128xf32, #tpu.memory_space<vmem>>, %arg5: memref<16x!tpu.dma_semaphore, #tpu.memory_space<semaphore_mem>>) attributes {dimension_semantics = [], scalar_prefetch = 0 : i64, scratch_operands = 2 : i64, tpu.core_type = #tpu.core_type<tc>} {
    %c0 = arith.constant 0 : index
    %0 = memref.load %arg0[%c0] : memref<16xi32, #tpu.memory_space<smem>>
    %c0_i32 = arith.constant 0 : i32
    %c0_i32_0 = arith.constant 0 : i32
    %1 = tpu.memref_slice %arg2[%0, %c0_i32_0] : memref<64x128xf32, #tpu.memory_space<any>> -> memref<1x128xf32, #tpu.memory_space<any>>
    %c0_i32_1 = arith.constant 0 : i32
    %c0_i32_2 = arith.constant 0 : i32
    %2 = tpu.memref_slice %arg4[%c0_i32_1, %c0_i32_2] : memref<16x128xf32, #tpu.memory_space<vmem>> -> memref<1x128xf32, #tpu.memory_space<vmem>>
    %3 = tpu.memref_slice %arg5[%c0_i32] : memref<16x!tpu.dma_semaphore, #tpu.memory_space<semaphore_mem>> -> memref<1x!tpu.dma_semaphore, #tpu.memory_space<semaphore_mem>>
    %4 = tpu.memref_squeeze %3 : memref<1x!tpu.dma_semaphore, #tpu.memory_space<semaphore_mem>> -> memref<!tpu.dma_semaphore, #tpu.memory_space<semaphore_mem>>
    tpu.enqueue_dma source(%1 : memref<1x128xf32, #tpu.memory_space<any>>) target(%2 : memref<1x128xf32, #tpu.memory_space<vmem>>) target_semaphore(%4 : memref<!tpu.dma_semaphore, #tpu.memory_space<semaphore_mem>>)
    %c1 = arith.constant 1 : index
    %5 = memref.load %arg0[%c1] : memref<16xi32, #tpu.memory_space<smem>>
    %c1_i32 = arith.constant 1 : i32
    %c0_i32_3 = arith.constant 0 : i32
    %6 = tpu.memref_slice %arg2[%5, %c0_i32_3] : memref<64x128xf32, #tpu.memory_space<any>> -> memref<1x128xf32, #tpu.memory_space<any>>
    %c1_i32_4 = arith.constant 1 : i32
    %c0_i32_5 = arith.constant 0 : i32
    %7 = tpu.memref_slice %arg4[%c1_i32_4, %c0_i32_5] : memref<16x128xf32, #tpu.memory_space<vmem>> -> memref<1x128xf32, #tpu.memory_space<vmem>>
    %8 = tpu.memref_slice %arg5[%c1_i32] : memref<16x!tpu.dma_semaphore, #tpu.memory_space<semaphore_mem>> -> memref<1x!tpu.dma_semaphore, #tpu.memory_space<semaphore_mem>>
    %9 = tpu.memref_squeeze %8 : memref<1x!tpu.dma_semaphore, #tpu.memory_space<semaphore_mem>> -> memref<!tpu.dma_semaphore, #tpu.memory_space<semaphore_mem>>
    tpu.enqueue_dma source(%6 : memref<1x128xf32, #tpu.memory_space<any>>) target(%7 : memref<1x128xf32, #tpu.memory_space<vmem>>) target_semaphore(%9 : memref<!tpu.dma_semaphore, #tpu.memory_space<semaphore_mem>>)
    %c2 = arith.constant 2 : index
    %10 = memref.load %arg0[%c2] : memref<16xi32, #tpu.memory_space<smem>>
    %c2_i32 = arith.constant 2 : i32
    %c0_i32_6 = arith.constant 0 : i32
    %11 = tpu.memref_slice %arg2[%10, %c0_i32_6] : memref<64x128xf32, #tpu.memory_space<any>> -> memref<1x128xf32, #tpu.memory_space<any>>
    %c2_i32_7 = arith.constant 2 : i32
    %c0_i32_8 = arith.constant 0 : i32
    %12 = tpu.memref_slice %arg4[%c2_i32_7, %c0_i32_8] : memref<16x128xf32, #tpu.memory_space<vmem>> -> memref<1x128xf32, #tpu.memory_space<vmem>>
    %13 = tpu.memref_slice %arg5[%c2_i32] : memref<16x!tpu.dma_semaphore, #tpu.memory_space<semaphore_mem>> -> memref<1x!tpu.dma_semaphore, #tpu.memory_space<semaphore_mem>>
    %14 = tpu.memref_squeeze %13 : memref<1x!tpu.dma_semaphore, #tpu.memory_space<semaphore_mem>> -> memref<!tpu.dma_semaphore, #tpu.memory_space<semaphore_mem>>
    tpu.enqueue_dma source(%11 : memref<1x128xf32, #tpu.memory_space<any>>) target(%12 : memref<1x128xf32, #tpu.memory_space<vmem>>) target_semaphore(%14 : memref<!tpu.dma_semaphore, #tpu.memory_space<semaphore_mem>>)
    %c3 = arith.constant 3 : index
    %15 = memref.load %arg0[%c3] : memref<16xi32, #tpu.memory_space<smem>>
    %c3_i32 = arith.constant 3 : i32
    %c0_i32_9 = arith.constant 0 : i32
    %16 = tpu.memref_slice %arg2[%15, %c0_i32_9] : memref<64x128xf32, #tpu.memory_space<any>> -> memref<1x128xf32, #tpu.memory_space<any>>
    %c3_i32_10 = arith.constant 3 : i32
    %c0_i32_11 = arith.constant 0 : i32
    %17 = tpu.memref_slice %arg4[%c3_i32_10, %c0_i32_11] : memref<16x128xf32, #tpu.memory_space<vmem>> -> memref<1x128xf32, #tpu.memory_space<vmem>>
    %18 = tpu.memref_slice %arg5[%c3_i32] : memref<16x!tpu.dma_semaphore, #tpu.memory_space<semaphore_mem>> -> memref<1x!tpu.dma_semaphore, #tpu.memory_space<semaphore_mem>>
    %19 = tpu.memref_squeeze %18 : memref<1x!tpu.dma_semaphore, #tpu.memory_space<semaphore_mem>> -> memref<!tpu.dma_semaphore, #tpu.memory_space<semaphore_mem>>
    tpu.enqueue_dma source(%16 : memref<1x128xf32, #tpu.memory_space<any>>) target(%17 : memref<1x128xf32, #tpu.memory_space<vmem>>) target_semaphore(%19 : memref<!tpu.dma_semaphore, #tpu.memory_space<semaphore_mem>>)
    %c4 = arith.constant 4 : index
    %20 = memref.load %arg0[%c4] : memref<16xi32, #tpu.memory_space<smem>>
    %c4_i32 = arith.constant 4 : i32
    %c0_i32_12 = arith.constant 0 : i32
    %21 = tpu.memref_slice %arg2[%20, %c0_i32_12] : memref<64x128xf32, #tpu.memory_space<any>> -> memref<1x128xf32, #tpu.memory_space<any>>
    %c4_i32_13 = arith.constant 4 : i32
    %c0_i32_14 = arith.constant 0 : i32
    %22 = tpu.memref_slice %arg4[%c4_i32_13, %c0_i32_14] : memref<16x128xf32, #tpu.memory_space<vmem>> -> memref<1x128xf32, #tpu.memory_space<vmem>>
    %23 = tpu.memref_slice %arg5[%c4_i32] : memref<16x!tpu.dma_semaphore, #tpu.memory_space<semaphore_mem>> -> memref<1x!tpu.dma_semaphore, #tpu.memory_space<semaphore_mem>>
    %24 = tpu.memref_squeeze %23 : memref<1x!tpu.dma_semaphore, #tpu.memory_space<semaphore_mem>> -> memref<!tpu.dma_semaphore, #tpu.memory_space<semaphore_mem>>
    tpu.enqueue_dma source(%21 : memref<1x128xf32, #tpu.memory_space<any>>) target(%22 : memref<1x128xf32, #tpu.memory_space<vmem>>) target_semaphore(%24 : memref<!tpu.dma_semaphore, #tpu.memory_space<semaphore_mem>>)
    %c5 = arith.constant 5 : index
    %25 = memref.load %arg0[%c5] : memref<16xi32, #tpu.memory_space<smem>>
    %c5_i32 = arith.constant 5 : i32
    %c0_i32_15 = arith.constant 0 : i32
    %26 = tpu.memref_slice %arg2[%25, %c0_i32_15] : memref<64x128xf32, #tpu.memory_space<any>> -> memref<1x128xf32, #tpu.memory_space<any>>
    %c5_i32_16 = arith.constant 5 : i32
    %c0_i32_17 = arith.constant 0 : i32
    %27 = tpu.memref_slice %arg4[%c5_i32_16, %c0_i32_17] : memref<16x128xf32, #tpu.memory_space<vmem>> -> memref<1x128xf32, #tpu.memory_space<vmem>>
    %28 = tpu.memref_slice %arg5[%c5_i32] : memref<16x!tpu.dma_semaphore, #tpu.memory_space<semaphore_mem>> -> memref<1x!tpu.dma_semaphore, #tpu.memory_space<semaphore_mem>>
    %29 = tpu.memref_squeeze %28 : memref<1x!tpu.dma_semaphore, #tpu.memory_space<semaphore_mem>> -> memref<!tpu.dma_semaphore, #tpu.memory_space<semaphore_mem>>
    tpu.enqueue_dma source(%26 : memref<1x128xf32, #tpu.memory_space<any>>) target(%27 : memref<1x128xf32, #tpu.memory_space<vmem>>) target_semaphore(%29 : memref<!tpu.dma_semaphore, #tpu.memory_space<semaphore_mem>>)
    %c6 = arith.constant 6 : index
    %30 = memref.load %arg0[%c6] : memref<16xi32, #tpu.memory_space<smem>>
    %c6_i32 = arith.constant 6 : i32
    %c0_i32_18 = arith.constant 0 : i32
    %31 = tpu.memref_slice %arg2[%30, %c0_i32_18] : memref<64x128xf32, #tpu.memory_space<any>> -> memref<1x128xf32, #tpu.memory_space<any>>
    %c6_i32_19 = arith.constant 6 : i32
    %c0_i32_20 = arith.constant 0 : i32
    %32 = tpu.memref_slice %arg4[%c6_i32_19, %c0_i32_20] : memref<16x128xf32, #tpu.memory_space<vmem>> -> memref<1x128xf32, #tpu.memory_space<vmem>>
    %33 = tpu.memref_slice %arg5[%c6_i32] : memref<16x!tpu.dma_semaphore, #tpu.memory_space<semaphore_mem>> -> memref<1x!tpu.dma_semaphore, #tpu.memory_space<semaphore_mem>>
    %34 = tpu.memref_squeeze %33 : memref<1x!tpu.dma_semaphore, #tpu.memory_space<semaphore_mem>> -> memref<!tpu.dma_semaphore, #tpu.memory_space<semaphore_mem>>
    tpu.enqueue_dma source(%31 : memref<1x128xf32, #tpu.memory_space<any>>) target(%32 : memref<1x128xf32, #tpu.memory_space<vmem>>) target_semaphore(%34 : memref<!tpu.dma_semaphore, #tpu.memory_space<semaphore_mem>>)
    %c7 = arith.constant 7 : index
    %35 = memref.load %arg0[%c7] : memref<16xi32, #tpu.memory_space<smem>>
    %c7_i32 = arith.constant 7 : i32
    %c0_i32_21 = arith.constant 0 : i32
    %36 = tpu.memref_slice %arg2[%35, %c0_i32_21] : memref<64x128xf32, #tpu.memory_space<any>> -> memref<1x128xf32, #tpu.memory_space<any>>
    %c7_i32_22 = arith.constant 7 : i32
    %c0_i32_23 = arith.constant 0 : i32
    %37 = tpu.memref_slice %arg4[%c7_i32_22, %c0_i32_23] : memref<16x128xf32, #tpu.memory_space<vmem>> -> memref<1x128xf32, #tpu.memory_space<vmem>>
    %38 = tpu.memref_slice %arg5[%c7_i32] : memref<16x!tpu.dma_semaphore, #tpu.memory_space<semaphore_mem>> -> memref<1x!tpu.dma_semaphore, #tpu.memory_space<semaphore_mem>>
    %39 = tpu.memref_squeeze %38 : memref<1x!tpu.dma_semaphore, #tpu.memory_space<semaphore_mem>> -> memref<!tpu.dma_semaphore, #tpu.memory_space<semaphore_mem>>
    tpu.enqueue_dma source(%36 : memref<1x128xf32, #tpu.memory_space<any>>) target(%37 : memref<1x128xf32, #tpu.memory_space<vmem>>) target_semaphore(%39 : memref<!tpu.dma_semaphore, #tpu.memory_space<semaphore_mem>>)
    %c8 = arith.constant 8 : index
    %40 = memref.load %arg0[%c8] : memref<16xi32, #tpu.memory_space<smem>>
    %c8_i32 = arith.constant 8 : i32
    %c0_i32_24 = arith.constant 0 : i32
    %41 = tpu.memref_slice %arg2[%40, %c0_i32_24] : memref<64x128xf32, #tpu.memory_space<any>> -> memref<1x128xf32, #tpu.memory_space<any>>
    %c8_i32_25 = arith.constant 8 : i32
    %c0_i32_26 = arith.constant 0 : i32
    %42 = tpu.memref_slice %arg4[%c8_i32_25, %c0_i32_26] : memref<16x128xf32, #tpu.memory_space<vmem>> -> memref<1x128xf32, #tpu.memory_space<vmem>>
    %43 = tpu.memref_slice %arg5[%c8_i32] : memref<16x!tpu.dma_semaphore, #tpu.memory_space<semaphore_mem>> -> memref<1x!tpu.dma_semaphore, #tpu.memory_space<semaphore_mem>>
    %44 = tpu.memref_squeeze %43 : memref<1x!tpu.dma_semaphore, #tpu.memory_space<semaphore_mem>> -> memref<!tpu.dma_semaphore, #tpu.memory_space<semaphore_mem>>
    tpu.enqueue_dma source(%41 : memref<1x128xf32, #tpu.memory_space<any>>) target(%42 : memref<1x128xf32, #tpu.memory_space<vmem>>) target_semaphore(%44 : memref<!tpu.dma_semaphore, #tpu.memory_space<semaphore_mem>>)
    %c9 = arith.constant 9 : index
    %45 = memref.load %arg0[%c9] : memref<16xi32, #tpu.memory_space<smem>>
    %c9_i32 = arith.constant 9 : i32
    %c0_i32_27 = arith.constant 0 : i32
    %46 = tpu.memref_slice %arg2[%45, %c0_i32_27] : memref<64x128xf32, #tpu.memory_space<any>> -> memref<1x128xf32, #tpu.memory_space<any>>
    %c9_i32_28 = arith.constant 9 : i32
    %c0_i32_29 = arith.constant 0 : i32
    %47 = tpu.memref_slice %arg4[%c9_i32_28, %c0_i32_29] : memref<16x128xf32, #tpu.memory_space<vmem>> -> memref<1x128xf32, #tpu.memory_space<vmem>>
    %48 = tpu.memref_slice %arg5[%c9_i32] : memref<16x!tpu.dma_semaphore, #tpu.memory_space<semaphore_mem>> -> memref<1x!tpu.dma_semaphore, #tpu.memory_space<semaphore_mem>>
    %49 = tpu.memref_squeeze %48 : memref<1x!tpu.dma_semaphore, #tpu.memory_space<semaphore_mem>> -> memref<!tpu.dma_semaphore, #tpu.memory_space<semaphore_mem>>
    tpu.enqueue_dma source(%46 : memref<1x128xf32, #tpu.memory_space<any>>) target(%47 : memref<1x128xf32, #tpu.memory_space<vmem>>) target_semaphore(%49 : memref<!tpu.dma_semaphore, #tpu.memory_space<semaphore_mem>>)
    %c10 = arith.constant 10 : index
    %50 = memref.load %arg0[%c10] : memref<16xi32, #tpu.memory_space<smem>>
    %c10_i32 = arith.constant 10 : i32
    %c0_i32_30 = arith.constant 0 : i32
    %51 = tpu.memref_slice %arg2[%50, %c0_i32_30] : memref<64x128xf32, #tpu.memory_space<any>> -> memref<1x128xf32, #tpu.memory_space<any>>
    %c10_i32_31 = arith.constant 10 : i32
    %c0_i32_32 = arith.constant 0 : i32
    %52 = tpu.memref_slice %arg4[%c10_i32_31, %c0_i32_32] : memref<16x128xf32, #tpu.memory_space<vmem>> -> memref<1x128xf32, #tpu.memory_space<vmem>>
    %53 = tpu.memref_slice %arg5[%c10_i32] : memref<16x!tpu.dma_semaphore, #tpu.memory_space<semaphore_mem>> -> memref<1x!tpu.dma_semaphore, #tpu.memory_space<semaphore_mem>>
    %54 = tpu.memref_squeeze %53 : memref<1x!tpu.dma_semaphore, #tpu.memory_space<semaphore_mem>> -> memref<!tpu.dma_semaphore, #tpu.memory_space<semaphore_mem>>
    tpu.enqueue_dma source(%51 : memref<1x128xf32, #tpu.memory_space<any>>) target(%52 : memref<1x128xf32, #tpu.memory_space<vmem>>) target_semaphore(%54 : memref<!tpu.dma_semaphore, #tpu.memory_space<semaphore_mem>>)
    %c11 = arith.constant 11 : index
    %55 = memref.load %arg0[%c11] : memref<16xi32, #tpu.memory_space<smem>>
    %c11_i32 = arith.constant 11 : i32
    %c0_i32_33 = arith.constant 0 : i32
    %56 = tpu.memref_slice %arg2[%55, %c0_i32_33] : memref<64x128xf32, #tpu.memory_space<any>> -> memref<1x128xf32, #tpu.memory_space<any>>
    %c11_i32_34 = arith.constant 11 : i32
    %c0_i32_35 = arith.constant 0 : i32
    %57 = tpu.memref_slice %arg4[%c11_i32_34, %c0_i32_35] : memref<16x128xf32, #tpu.memory_space<vmem>> -> memref<1x128xf32, #tpu.memory_space<vmem>>
    %58 = tpu.memref_slice %arg5[%c11_i32] : memref<16x!tpu.dma_semaphore, #tpu.memory_space<semaphore_mem>> -> memref<1x!tpu.dma_semaphore, #tpu.memory_space<semaphore_mem>>
    %59 = tpu.memref_squeeze %58 : memref<1x!tpu.dma_semaphore, #tpu.memory_space<semaphore_mem>> -> memref<!tpu.dma_semaphore, #tpu.memory_space<semaphore_mem>>
    tpu.enqueue_dma source(%56 : memref<1x128xf32, #tpu.memory_space<any>>) target(%57 : memref<1x128xf32, #tpu.memory_space<vmem>>) target_semaphore(%59 : memref<!tpu.dma_semaphore, #tpu.memory_space<semaphore_mem>>)
    %c12 = arith.constant 12 : index
    %60 = memref.load %arg0[%c12] : memref<16xi32, #tpu.memory_space<smem>>
    %c12_i32 = arith.constant 12 : i32
    %c0_i32_36 = arith.constant 0 : i32
    %61 = tpu.memref_slice %arg2[%60, %c0_i32_36] : memref<64x128xf32, #tpu.memory_space<any>> -> memref<1x128xf32, #tpu.memory_space<any>>
    %c12_i32_37 = arith.constant 12 : i32
    %c0_i32_38 = arith.constant 0 : i32
    %62 = tpu.memref_slice %arg4[%c12_i32_37, %c0_i32_38] : memref<16x128xf32, #tpu.memory_space<vmem>> -> memref<1x128xf32, #tpu.memory_space<vmem>>
    %63 = tpu.memref_slice %arg5[%c12_i32] : memref<16x!tpu.dma_semaphore, #tpu.memory_space<semaphore_mem>> -> memref<1x!tpu.dma_semaphore, #tpu.memory_space<semaphore_mem>>
    %64 = tpu.memref_squeeze %63 : memref<1x!tpu.dma_semaphore, #tpu.memory_space<semaphore_mem>> -> memref<!tpu.dma_semaphore, #tpu.memory_space<semaphore_mem>>
    tpu.enqueue_dma source(%61 : memref<1x128xf32, #tpu.memory_space<any>>) target(%62 : memref<1x128xf32, #tpu.memory_space<vmem>>) target_semaphore(%64 : memref<!tpu.dma_semaphore, #tpu.memory_space<semaphore_mem>>)
    %c13 = arith.constant 13 : index
    %65 = memref.load %arg0[%c13] : memref<16xi32, #tpu.memory_space<smem>>
    %c13_i32 = arith.constant 13 : i32
    %c0_i32_39 = arith.constant 0 : i32
    %66 = tpu.memref_slice %arg2[%65, %c0_i32_39] : memref<64x128xf32, #tpu.memory_space<any>> -> memref<1x128xf32, #tpu.memory_space<any>>
    %c13_i32_40 = arith.constant 13 : i32
    %c0_i32_41 = arith.constant 0 : i32
    %67 = tpu.memref_slice %arg4[%c13_i32_40, %c0_i32_41] : memref<16x128xf32, #tpu.memory_space<vmem>> -> memref<1x128xf32, #tpu.memory_space<vmem>>
    %68 = tpu.memref_slice %arg5[%c13_i32] : memref<16x!tpu.dma_semaphore, #tpu.memory_space<semaphore_mem>> -> memref<1x!tpu.dma_semaphore, #tpu.memory_space<semaphore_mem>>
    %69 = tpu.memref_squeeze %68 : memref<1x!tpu.dma_semaphore, #tpu.memory_space<semaphore_mem>> -> memref<!tpu.dma_semaphore, #tpu.memory_space<semaphore_mem>>
    tpu.enqueue_dma source(%66 : memref<1x128xf32, #tpu.memory_space<any>>) target(%67 : memref<1x128xf32, #tpu.memory_space<vmem>>) target_semaphore(%69 : memref<!tpu.dma_semaphore, #tpu.memory_space<semaphore_mem>>)
    %c14 = arith.constant 14 : index
    %70 = memref.load %arg0[%c14] : memref<16xi32, #tpu.memory_space<smem>>
    %c14_i32 = arith.constant 14 : i32
    %c0_i32_42 = arith.constant 0 : i32
    %71 = tpu.memref_slice %arg2[%70, %c0_i32_42] : memref<64x128xf32, #tpu.memory_space<any>> -> memref<1x128xf32, #tpu.memory_space<any>>
    %c14_i32_43 = arith.constant 14 : i32
    %c0_i32_44 = arith.constant 0 : i32
    %72 = tpu.memref_slice %arg4[%c14_i32_43, %c0_i32_44] : memref<16x128xf32, #tpu.memory_space<vmem>> -> memref<1x128xf32, #tpu.memory_space<vmem>>
    %73 = tpu.memref_slice %arg5[%c14_i32] : memref<16x!tpu.dma_semaphore, #tpu.memory_space<semaphore_mem>> -> memref<1x!tpu.dma_semaphore, #tpu.memory_space<semaphore_mem>>
    %74 = tpu.memref_squeeze %73 : memref<1x!tpu.dma_semaphore, #tpu.memory_space<semaphore_mem>> -> memref<!tpu.dma_semaphore, #tpu.memory_space<semaphore_mem>>
    tpu.enqueue_dma source(%71 : memref<1x128xf32, #tpu.memory_space<any>>) target(%72 : memref<1x128xf32, #tpu.memory_space<vmem>>) target_semaphore(%74 : memref<!tpu.dma_semaphore, #tpu.memory_space<semaphore_mem>>)
    %c15 = arith.constant 15 : index
    %75 = memref.load %arg0[%c15] : memref<16xi32, #tpu.memory_space<smem>>
    %c15_i32 = arith.constant 15 : i32
    %c0_i32_45 = arith.constant 0 : i32
    %76 = tpu.memref_slice %arg2[%75, %c0_i32_45] : memref<64x128xf32, #tpu.memory_space<any>> -> memref<1x128xf32, #tpu.memory_space<any>>
    %c15_i32_46 = arith.constant 15 : i32
    %c0_i32_47 = arith.constant 0 : i32
    %77 = tpu.memref_slice %arg4[%c15_i32_46, %c0_i32_47] : memref<16x128xf32, #tpu.memory_space<vmem>> -> memref<1x128xf32, #tpu.memory_space<vmem>>
    %78 = tpu.memref_slice %arg5[%c15_i32] : memref<16x!tpu.dma_semaphore, #tpu.memory_space<semaphore_mem>> -> memref<1x!tpu.dma_semaphore, #tpu.memory_space<semaphore_mem>>
    %79 = tpu.memref_squeeze %78 : memref<1x!tpu.dma_semaphore, #tpu.memory_space<semaphore_mem>> -> memref<!tpu.dma_semaphore, #tpu.memory_space<semaphore_mem>>
    tpu.enqueue_dma source(%76 : memref<1x128xf32, #tpu.memory_space<any>>) target(%77 : memref<1x128xf32, #tpu.memory_space<vmem>>) target_semaphore(%79 : memref<!tpu.dma_semaphore, #tpu.memory_space<semaphore_mem>>)
    %c0_i32_48 = arith.constant 0 : i32
    %c0_i32_49 = arith.constant 0 : i32
    %c0_i32_50 = arith.constant 0 : i32
    %80 = tpu.memref_slice %arg2[%c0_i32_49, %c0_i32_50] : memref<64x128xf32, #tpu.memory_space<any>> -> memref<1x128xf32, #tpu.memory_space<any>>
    %c0_i32_51 = arith.constant 0 : i32
    %c0_i32_52 = arith.constant 0 : i32
    %81 = tpu.memref_slice %arg4[%c0_i32_51, %c0_i32_52] : memref<16x128xf32, #tpu.memory_space<vmem>> -> memref<1x128xf32, #tpu.memory_space<vmem>>
    %82 = tpu.memref_slice %arg5[%c0_i32_48] : memref<16x!tpu.dma_semaphore, #tpu.memory_space<semaphore_mem>> -> memref<1x!tpu.dma_semaphore, #tpu.memory_space<semaphore_mem>>
    %83 = tpu.memref_squeeze %82 : memref<1x!tpu.dma_semaphore, #tpu.memory_space<semaphore_mem>> -> memref<!tpu.dma_semaphore, #tpu.memory_space<semaphore_mem>>
    tpu.wait_dma2 semaphore(%83 : memref<!tpu.dma_semaphore, #tpu.memory_space<semaphore_mem>>) src(%80 : memref<1x128xf32, #tpu.memory_space<any>>) dst(%81 : memref<1x128xf32, #tpu.memory_space<vmem>>)
    %c1_i32_53 = arith.constant 1 : i32
    %c0_i32_54 = arith.constant 0 : i32
    %c0_i32_55 = arith.constant 0 : i32
    %84 = tpu.memref_slice %arg2[%c0_i32_54, %c0_i32_55] : memref<64x128xf32, #tpu.memory_space<any>> -> memref<1x128xf32, #tpu.memory_space<any>>
    %c1_i32_56 = arith.constant 1 : i32
    %c0_i32_57 = arith.constant 0 : i32
    %85 = tpu.memref_slice %arg4[%c1_i32_56, %c0_i32_57] : memref<16x128xf32, #tpu.memory_space<vmem>> -> memref<1x128xf32, #tpu.memory_space<vmem>>
    %86 = tpu.memref_slice %arg5[%c1_i32_53] : memref<16x!tpu.dma_semaphore, #tpu.memory_space<semaphore_mem>> -> memref<1x!tpu.dma_semaphore, #tpu.memory_space<semaphore_mem>>
    %87 = tpu.memref_squeeze %86 : memref<1x!tpu.dma_semaphore, #tpu.memory_space<semaphore_mem>> -> memref<!tpu.dma_semaphore, #tpu.memory_space<semaphore_mem>>
    tpu.wait_dma2 semaphore(%87 : memref<!tpu.dma_semaphore, #tpu.memory_space<semaphore_mem>>) src(%84 : memref<1x128xf32, #tpu.memory_space<any>>) dst(%85 : memref<1x128xf32, #tpu.memory_space<vmem>>)
    %c2_i32_58 = arith.constant 2 : i32
    %c0_i32_59 = arith.constant 0 : i32
    %c0_i32_60 = arith.constant 0 : i32
    %88 = tpu.memref_slice %arg2[%c0_i32_59, %c0_i32_60] : memref<64x128xf32, #tpu.memory_space<any>> -> memref<1x128xf32, #tpu.memory_space<any>>
    %c2_i32_61 = arith.constant 2 : i32
    %c0_i32_62 = arith.constant 0 : i32
    %89 = tpu.memref_slice %arg4[%c2_i32_61, %c0_i32_62] : memref<16x128xf32, #tpu.memory_space<vmem>> -> memref<1x128xf32, #tpu.memory_space<vmem>>
    %90 = tpu.memref_slice %arg5[%c2_i32_58] : memref<16x!tpu.dma_semaphore, #tpu.memory_space<semaphore_mem>> -> memref<1x!tpu.dma_semaphore, #tpu.memory_space<semaphore_mem>>
    %91 = tpu.memref_squeeze %90 : memref<1x!tpu.dma_semaphore, #tpu.memory_space<semaphore_mem>> -> memref<!tpu.dma_semaphore, #tpu.memory_space<semaphore_mem>>
    tpu.wait_dma2 semaphore(%91 : memref<!tpu.dma_semaphore, #tpu.memory_space<semaphore_mem>>) src(%88 : memref<1x128xf32, #tpu.memory_space<any>>) dst(%89 : memref<1x128xf32, #tpu.memory_space<vmem>>)
    %c3_i32_63 = arith.constant 3 : i32
    %c0_i32_64 = arith.constant 0 : i32
    %c0_i32_65 = arith.constant 0 : i32
    %92 = tpu.memref_slice %arg2[%c0_i32_64, %c0_i32_65] : memref<64x128xf32, #tpu.memory_space<any>> -> memref<1x128xf32, #tpu.memory_space<any>>
    %c3_i32_66 = arith.constant 3 : i32
    %c0_i32_67 = arith.constant 0 : i32
    %93 = tpu.memref_slice %arg4[%c3_i32_66, %c0_i32_67] : memref<16x128xf32, #tpu.memory_space<vmem>> -> memref<1x128xf32, #tpu.memory_space<vmem>>
    %94 = tpu.memref_slice %arg5[%c3_i32_63] : memref<16x!tpu.dma_semaphore, #tpu.memory_space<semaphore_mem>> -> memref<1x!tpu.dma_semaphore, #tpu.memory_space<semaphore_mem>>
    %95 = tpu.memref_squeeze %94 : memref<1x!tpu.dma_semaphore, #tpu.memory_space<semaphore_mem>> -> memref<!tpu.dma_semaphore, #tpu.memory_space<semaphore_mem>>
    tpu.wait_dma2 semaphore(%95 : memref<!tpu.dma_semaphore, #tpu.memory_space<semaphore_mem>>) src(%92 : memref<1x128xf32, #tpu.memory_space<any>>) dst(%93 : memref<1x128xf32, #tpu.memory_space<vmem>>)
    %c4_i32_68 = arith.constant 4 : i32
    %c0_i32_69 = arith.constant 0 : i32
    %c0_i32_70 = arith.constant 0 : i32
    %96 = tpu.memref_slice %arg2[%c0_i32_69, %c0_i32_70] : memref<64x128xf32, #tpu.memory_space<any>> -> memref<1x128xf32, #tpu.memory_space<any>>
    %c4_i32_71 = arith.constant 4 : i32
    %c0_i32_72 = arith.constant 0 : i32
    %97 = tpu.memref_slice %arg4[%c4_i32_71, %c0_i32_72] : memref<16x128xf32, #tpu.memory_space<vmem>> -> memref<1x128xf32, #tpu.memory_space<vmem>>
    %98 = tpu.memref_slice %arg5[%c4_i32_68] : memref<16x!tpu.dma_semaphore, #tpu.memory_space<semaphore_mem>> -> memref<1x!tpu.dma_semaphore, #tpu.memory_space<semaphore_mem>>
    %99 = tpu.memref_squeeze %98 : memref<1x!tpu.dma_semaphore, #tpu.memory_space<semaphore_mem>> -> memref<!tpu.dma_semaphore, #tpu.memory_space<semaphore_mem>>
    tpu.wait_dma2 semaphore(%99 : memref<!tpu.dma_semaphore, #tpu.memory_space<semaphore_mem>>) src(%96 : memref<1x128xf32, #tpu.memory_space<any>>) dst(%97 : memref<1x128xf32, #tpu.memory_space<vmem>>)
    %c5_i32_73 = arith.constant 5 : i32
    %c0_i32_74 = arith.constant 0 : i32
    %c0_i32_75 = arith.constant 0 : i32
    %100 = tpu.memref_slice %arg2[%c0_i32_74, %c0_i32_75] : memref<64x128xf32, #tpu.memory_space<any>> -> memref<1x128xf32, #tpu.memory_space<any>>
    %c5_i32_76 = arith.constant 5 : i32
    %c0_i32_77 = arith.constant 0 : i32
    %101 = tpu.memref_slice %arg4[%c5_i32_76, %c0_i32_77] : memref<16x128xf32, #tpu.memory_space<vmem>> -> memref<1x128xf32, #tpu.memory_space<vmem>>
    %102 = tpu.memref_slice %arg5[%c5_i32_73] : memref<16x!tpu.dma_semaphore, #tpu.memory_space<semaphore_mem>> -> memref<1x!tpu.dma_semaphore, #tpu.memory_space<semaphore_mem>>
    %103 = tpu.memref_squeeze %102 : memref<1x!tpu.dma_semaphore, #tpu.memory_space<semaphore_mem>> -> memref<!tpu.dma_semaphore, #tpu.memory_space<semaphore_mem>>
    tpu.wait_dma2 semaphore(%103 : memref<!tpu.dma_semaphore, #tpu.memory_space<semaphore_mem>>) src(%100 : memref<1x128xf32, #tpu.memory_space<any>>) dst(%101 : memref<1x128xf32, #tpu.memory_space<vmem>>)
    %c6_i32_78 = arith.constant 6 : i32
    %c0_i32_79 = arith.constant 0 : i32
    %c0_i32_80 = arith.constant 0 : i32
    %104 = tpu.memref_slice %arg2[%c0_i32_79, %c0_i32_80] : memref<64x128xf32, #tpu.memory_space<any>> -> memref<1x128xf32, #tpu.memory_space<any>>
    %c6_i32_81 = arith.constant 6 : i32
    %c0_i32_82 = arith.constant 0 : i32
    %105 = tpu.memref_slice %arg4[%c6_i32_81, %c0_i32_82] : memref<16x128xf32, #tpu.memory_space<vmem>> -> memref<1x128xf32, #tpu.memory_space<vmem>>
    %106 = tpu.memref_slice %arg5[%c6_i32_78] : memref<16x!tpu.dma_semaphore, #tpu.memory_space<semaphore_mem>> -> memref<1x!tpu.dma_semaphore, #tpu.memory_space<semaphore_mem>>
    %107 = tpu.memref_squeeze %106 : memref<1x!tpu.dma_semaphore, #tpu.memory_space<semaphore_mem>> -> memref<!tpu.dma_semaphore, #tpu.memory_space<semaphore_mem>>
    tpu.wait_dma2 semaphore(%107 : memref<!tpu.dma_semaphore, #tpu.memory_space<semaphore_mem>>) src(%104 : memref<1x128xf32, #tpu.memory_space<any>>) dst(%105 : memref<1x128xf32, #tpu.memory_space<vmem>>)
    %c7_i32_83 = arith.constant 7 : i32
    %c0_i32_84 = arith.constant 0 : i32
    %c0_i32_85 = arith.constant 0 : i32
    %108 = tpu.memref_slice %arg2[%c0_i32_84, %c0_i32_85] : memref<64x128xf32, #tpu.memory_space<any>> -> memref<1x128xf32, #tpu.memory_space<any>>
    %c7_i32_86 = arith.constant 7 : i32
    %c0_i32_87 = arith.constant 0 : i32
    %109 = tpu.memref_slice %arg4[%c7_i32_86, %c0_i32_87] : memref<16x128xf32, #tpu.memory_space<vmem>> -> memref<1x128xf32, #tpu.memory_space<vmem>>
    %110 = tpu.memref_slice %arg5[%c7_i32_83] : memref<16x!tpu.dma_semaphore, #tpu.memory_space<semaphore_mem>> -> memref<1x!tpu.dma_semaphore, #tpu.memory_space<semaphore_mem>>
    %111 = tpu.memref_squeeze %110 : memref<1x!tpu.dma_semaphore, #tpu.memory_space<semaphore_mem>> -> memref<!tpu.dma_semaphore, #tpu.memory_space<semaphore_mem>>
    tpu.wait_dma2 semaphore(%111 : memref<!tpu.dma_semaphore, #tpu.memory_space<semaphore_mem>>) src(%108 : memref<1x128xf32, #tpu.memory_space<any>>) dst(%109 : memref<1x128xf32, #tpu.memory_space<vmem>>)
    %c8_i32_88 = arith.constant 8 : i32
    %c0_i32_89 = arith.constant 0 : i32
    %c0_i32_90 = arith.constant 0 : i32
    %112 = tpu.memref_slice %arg2[%c0_i32_89, %c0_i32_90] : memref<64x128xf32, #tpu.memory_space<any>> -> memref<1x128xf32, #tpu.memory_space<any>>
    %c8_i32_91 = arith.constant 8 : i32
    %c0_i32_92 = arith.constant 0 : i32
    %113 = tpu.memref_slice %arg4[%c8_i32_91, %c0_i32_92] : memref<16x128xf32, #tpu.memory_space<vmem>> -> memref<1x128xf32, #tpu.memory_space<vmem>>
    %114 = tpu.memref_slice %arg5[%c8_i32_88] : memref<16x!tpu.dma_semaphore, #tpu.memory_space<semaphore_mem>> -> memref<1x!tpu.dma_semaphore, #tpu.memory_space<semaphore_mem>>
    %115 = tpu.memref_squeeze %114 : memref<1x!tpu.dma_semaphore, #tpu.memory_space<semaphore_mem>> -> memref<!tpu.dma_semaphore, #tpu.memory_space<semaphore_mem>>
    tpu.wait_dma2 semaphore(%115 : memref<!tpu.dma_semaphore, #tpu.memory_space<semaphore_mem>>) src(%112 : memref<1x128xf32, #tpu.memory_space<any>>) dst(%113 : memref<1x128xf32, #tpu.memory_space<vmem>>)
    %c9_i32_93 = arith.constant 9 : i32
    %c0_i32_94 = arith.constant 0 : i32
    %c0_i32_95 = arith.constant 0 : i32
    %116 = tpu.memref_slice %arg2[%c0_i32_94, %c0_i32_95] : memref<64x128xf32, #tpu.memory_space<any>> -> memref<1x128xf32, #tpu.memory_space<any>>
    %c9_i32_96 = arith.constant 9 : i32
    %c0_i32_97 = arith.constant 0 : i32
    %117 = tpu.memref_slice %arg4[%c9_i32_96, %c0_i32_97] : memref<16x128xf32, #tpu.memory_space<vmem>> -> memref<1x128xf32, #tpu.memory_space<vmem>>
    %118 = tpu.memref_slice %arg5[%c9_i32_93] : memref<16x!tpu.dma_semaphore, #tpu.memory_space<semaphore_mem>> -> memref<1x!tpu.dma_semaphore, #tpu.memory_space<semaphore_mem>>
    %119 = tpu.memref_squeeze %118 : memref<1x!tpu.dma_semaphore, #tpu.memory_space<semaphore_mem>> -> memref<!tpu.dma_semaphore, #tpu.memory_space<semaphore_mem>>
    tpu.wait_dma2 semaphore(%119 : memref<!tpu.dma_semaphore, #tpu.memory_space<semaphore_mem>>) src(%116 : memref<1x128xf32, #tpu.memory_space<any>>) dst(%117 : memref<1x128xf32, #tpu.memory_space<vmem>>)
    %c10_i32_98 = arith.constant 10 : i32
    %c0_i32_99 = arith.constant 0 : i32
    %c0_i32_100 = arith.constant 0 : i32
    %120 = tpu.memref_slice %arg2[%c0_i32_99, %c0_i32_100] : memref<64x128xf32, #tpu.memory_space<any>> -> memref<1x128xf32, #tpu.memory_space<any>>
    %c10_i32_101 = arith.constant 10 : i32
    %c0_i32_102 = arith.constant 0 : i32
    %121 = tpu.memref_slice %arg4[%c10_i32_101, %c0_i32_102] : memref<16x128xf32, #tpu.memory_space<vmem>> -> memref<1x128xf32, #tpu.memory_space<vmem>>
    %122 = tpu.memref_slice %arg5[%c10_i32_98] : memref<16x!tpu.dma_semaphore, #tpu.memory_space<semaphore_mem>> -> memref<1x!tpu.dma_semaphore, #tpu.memory_space<semaphore_mem>>
    %123 = tpu.memref_squeeze %122 : memref<1x!tpu.dma_semaphore, #tpu.memory_space<semaphore_mem>> -> memref<!tpu.dma_semaphore, #tpu.memory_space<semaphore_mem>>
    tpu.wait_dma2 semaphore(%123 : memref<!tpu.dma_semaphore, #tpu.memory_space<semaphore_mem>>) src(%120 : memref<1x128xf32, #tpu.memory_space<any>>) dst(%121 : memref<1x128xf32, #tpu.memory_space<vmem>>)
    %c11_i32_103 = arith.constant 11 : i32
    %c0_i32_104 = arith.constant 0 : i32
    %c0_i32_105 = arith.constant 0 : i32
    %124 = tpu.memref_slice %arg2[%c0_i32_104, %c0_i32_105] : memref<64x128xf32, #tpu.memory_space<any>> -> memref<1x128xf32, #tpu.memory_space<any>>
    %c11_i32_106 = arith.constant 11 : i32
    %c0_i32_107 = arith.constant 0 : i32
    %125 = tpu.memref_slice %arg4[%c11_i32_106, %c0_i32_107] : memref<16x128xf32, #tpu.memory_space<vmem>> -> memref<1x128xf32, #tpu.memory_space<vmem>>
    %126 = tpu.memref_slice %arg5[%c11_i32_103] : memref<16x!tpu.dma_semaphore, #tpu.memory_space<semaphore_mem>> -> memref<1x!tpu.dma_semaphore, #tpu.memory_space<semaphore_mem>>
    %127 = tpu.memref_squeeze %126 : memref<1x!tpu.dma_semaphore, #tpu.memory_space<semaphore_mem>> -> memref<!tpu.dma_semaphore, #tpu.memory_space<semaphore_mem>>
    tpu.wait_dma2 semaphore(%127 : memref<!tpu.dma_semaphore, #tpu.memory_space<semaphore_mem>>) src(%124 : memref<1x128xf32, #tpu.memory_space<any>>) dst(%125 : memref<1x128xf32, #tpu.memory_space<vmem>>)
    %c12_i32_108 = arith.constant 12 : i32
    %c0_i32_109 = arith.constant 0 : i32
    %c0_i32_110 = arith.constant 0 : i32
    %128 = tpu.memref_slice %arg2[%c0_i32_109, %c0_i32_110] : memref<64x128xf32, #tpu.memory_space<any>> -> memref<1x128xf32, #tpu.memory_space<any>>
    %c12_i32_111 = arith.constant 12 : i32
    %c0_i32_112 = arith.constant 0 : i32
    %129 = tpu.memref_slice %arg4[%c12_i32_111, %c0_i32_112] : memref<16x128xf32, #tpu.memory_space<vmem>> -> memref<1x128xf32, #tpu.memory_space<vmem>>
    %130 = tpu.memref_slice %arg5[%c12_i32_108] : memref<16x!tpu.dma_semaphore, #tpu.memory_space<semaphore_mem>> -> memref<1x!tpu.dma_semaphore, #tpu.memory_space<semaphore_mem>>
    %131 = tpu.memref_squeeze %130 : memref<1x!tpu.dma_semaphore, #tpu.memory_space<semaphore_mem>> -> memref<!tpu.dma_semaphore, #tpu.memory_space<semaphore_mem>>
    tpu.wait_dma2 semaphore(%131 : memref<!tpu.dma_semaphore, #tpu.memory_space<semaphore_mem>>) src(%128 : memref<1x128xf32, #tpu.memory_space<any>>) dst(%129 : memref<1x128xf32, #tpu.memory_space<vmem>>)
    %c13_i32_113 = arith.constant 13 : i32
    %c0_i32_114 = arith.constant 0 : i32
    %c0_i32_115 = arith.constant 0 : i32
    %132 = tpu.memref_slice %arg2[%c0_i32_114, %c0_i32_115] : memref<64x128xf32, #tpu.memory_space<any>> -> memref<1x128xf32, #tpu.memory_space<any>>
    %c13_i32_116 = arith.constant 13 : i32
    %c0_i32_117 = arith.constant 0 : i32
    %133 = tpu.memref_slice %arg4[%c13_i32_116, %c0_i32_117] : memref<16x128xf32, #tpu.memory_space<vmem>> -> memref<1x128xf32, #tpu.memory_space<vmem>>
    %134 = tpu.memref_slice %arg5[%c13_i32_113] : memref<16x!tpu.dma_semaphore, #tpu.memory_space<semaphore_mem>> -> memref<1x!tpu.dma_semaphore, #tpu.memory_space<semaphore_mem>>
    %135 = tpu.memref_squeeze %134 : memref<1x!tpu.dma_semaphore, #tpu.memory_space<semaphore_mem>> -> memref<!tpu.dma_semaphore, #tpu.memory_space<semaphore_mem>>
    tpu.wait_dma2 semaphore(%135 : memref<!tpu.dma_semaphore, #tpu.memory_space<semaphore_mem>>) src(%132 : memref<1x128xf32, #tpu.memory_space<any>>) dst(%133 : memref<1x128xf32, #tpu.memory_space<vmem>>)
    %c14_i32_118 = arith.constant 14 : i32
    %c0_i32_119 = arith.constant 0 : i32
    %c0_i32_120 = arith.constant 0 : i32
    %136 = tpu.memref_slice %arg2[%c0_i32_119, %c0_i32_120] : memref<64x128xf32, #tpu.memory_space<any>> -> memref<1x128xf32, #tpu.memory_space<any>>
    %c14_i32_121 = arith.constant 14 : i32
    %c0_i32_122 = arith.constant 0 : i32
    %137 = tpu.memref_slice %arg4[%c14_i32_121, %c0_i32_122] : memref<16x128xf32, #tpu.memory_space<vmem>> -> memref<1x128xf32, #tpu.memory_space<vmem>>
    %138 = tpu.memref_slice %arg5[%c14_i32_118] : memref<16x!tpu.dma_semaphore, #tpu.memory_space<semaphore_mem>> -> memref<1x!tpu.dma_semaphore, #tpu.memory_space<semaphore_mem>>
    %139 = tpu.memref_squeeze %138 : memref<1x!tpu.dma_semaphore, #tpu.memory_space<semaphore_mem>> -> memref<!tpu.dma_semaphore, #tpu.memory_space<semaphore_mem>>
    tpu.wait_dma2 semaphore(%139 : memref<!tpu.dma_semaphore, #tpu.memory_space<semaphore_mem>>) src(%136 : memref<1x128xf32, #tpu.memory_space<any>>) dst(%137 : memref<1x128xf32, #tpu.memory_space<vmem>>)
    %c15_i32_123 = arith.constant 15 : i32
    %c0_i32_124 = arith.constant 0 : i32
    %c0_i32_125 = arith.constant 0 : i32
    %140 = tpu.memref_slice %arg2[%c0_i32_124, %c0_i32_125] : memref<64x128xf32, #tpu.memory_space<any>> -> memref<1x128xf32, #tpu.memory_space<any>>
    %c15_i32_126 = arith.constant 15 : i32
    %c0_i32_127 = arith.constant 0 : i32
    %141 = tpu.memref_slice %arg4[%c15_i32_126, %c0_i32_127] : memref<16x128xf32, #tpu.memory_space<vmem>> -> memref<1x128xf32, #tpu.memory_space<vmem>>
    %142 = tpu.memref_slice %arg5[%c15_i32_123] : memref<16x!tpu.dma_semaphore, #tpu.memory_space<semaphore_mem>> -> memref<1x!tpu.dma_semaphore, #tpu.memory_space<semaphore_mem>>
    %143 = tpu.memref_squeeze %142 : memref<1x!tpu.dma_semaphore, #tpu.memory_space<semaphore_mem>> -> memref<!tpu.dma_semaphore, #tpu.memory_space<semaphore_mem>>
    tpu.wait_dma2 semaphore(%143 : memref<!tpu.dma_semaphore, #tpu.memory_space<semaphore_mem>>) src(%140 : memref<1x128xf32, #tpu.memory_space<any>>) dst(%141 : memref<1x128xf32, #tpu.memory_space<vmem>>)
    %c0_128 = arith.constant 0 : index
    %c0_129 = arith.constant 0 : index
    %144 = vector.load %arg4[%c0_128, %c0_129] : memref<16x128xf32, #tpu.memory_space<vmem>>, vector<16x128xf32>
    %c0_130 = arith.constant 0 : index
    %c0_131 = arith.constant 0 : index
    %145 = vector.load %arg1[%c0_130, %c0_131] : memref<16x128xf32, #tpu.memory_space<vmem>>, vector<16x128xf32>
    %146 = arith.addf %144, %145 : vector<16x128xf32>
    %c0_132 = arith.constant 0 : index
    %c0_133 = arith.constant 0 : index
    %147 = vector.load %arg3[%c0_132, %c0_133] : memref<16x128xf32, #tpu.memory_space<vmem>>, vector<16x128xf32>
    tpu.vector_store %arg3[%c0_132, %c0_133], %146 {strides = array<i32>} : memref<16x128xf32, #tpu.memory_space<vmem>>, vector<16x128xf32>,
    return
  }
}

</mosaic_0001>

<bundles_post_ra>
// kernel: tpu_custom_call.1
= control target key start
LH: loop header
LB: loop body
LE: loop exit
PB: predicated region body
PF: predicated region fallthrough
CT: control target
= control target key end

     0   :  { %8 = vsyncpa [#allocation7], 0  ;;  %s1261_s0 = inlined_call_operand.hbm [shape: s32[16], index: 0, kind: input, shape index: {}]   ;;  %s1262_s1 = inlined_call_operand.hbm [shape: f32[16,128], index: 1, kind: input, shape index: {}]   ;;  %s1263_s2 = inlined_call_operand.hbm [shape: f32[64,128], index: 2, kind: input, shape index: {}]   ;;  %s1264_s3 = inlined_call_operand.hbm [shape: f32[16,128], index: 3, kind: output, shape index: {}]  }
   0x1   :  { %9 = vsyncpa [#allocation5], 0 }
   0x2   :  { %10 = vsyncpa [#allocation6], 0  ;;  %s16_s14 = sshll.u32 %s1261_s0, 4  ;;  %s24_s17 = sshll.u32 %s1262_s1, 4  ;;  %s17_s14 = int_to_ptr.hbm [resolvable:$true] %s16_s14  ;;  %s25_s17 = int_to_ptr.hbm [resolvable:$true] %s24_s17 }
   0x3   :  { %s1034_s18 = smov [#allocation4]   ;;  %s1035_s19 = smov [#allocation8]  }
   0x4   :  { %19 = dma.hbm_to_smem %s17_s14, 16, %s1034_s18, [#allocation7]  }
   0x5   :  { %s26_s20 = sshll.u32 %s1035_s19, 4  ;;  %s1036_s21 = smov 128   ;;  %s27_s20 = int_to_ptr.vmem [resolvable:$true] %s26_s20 }
   0x6   :  { %s1037_s22 = smov 8  }
   0x7   :  { %32 = dma.hbm_to_vmem [thread:$0]  %s25_s17, 256, %s27_s20, [#allocation5], %s1036_s21, %s1036_s21, %s1037_s22  }
   0x8   :  { %996 = dma.done.wait [#allocation7], 16  }
   0x9   :  { %997 = vsyncadd [#allocation7], 4294967280 }
   0xa   :  { %998 = dma.done.wait [#allocation5], 256  }
   0xb   :  { %999 = vsyncadd [#allocation5], 4294967040 }
   0xc   :  { %41 = sfence }
   0xd   :  { %s42_s0 = sld [smem:[#allocation4]]  ;;  %s1038_s23 = smov [#allocation2]  }
   0xe   :  { %s53_s1 = sshll.u32 %s1038_s23, 4  ;;  %s500_s24 = sld [smem:[#allocation4 + $0x1]]  ;;  %s54_s1 = int_to_ptr.vmem [resolvable:$true] %s53_s1 }
   0xf   :  { %s1039_s25 = smov [#allocation2 + $0x1]   ;;  %s1086_s27 = sld [smem:[#allocation4 + $0x2]] }
  0x10   :  { %s1084_s26 = sshll.u32 %s1039_s25, 4  ;;  %s1040_s28 = smov [#allocation2 + $0x2]   ;;  %s71_s26 = int_to_ptr.vmem [resolvable:$true] %s1084_s26 }
  0x11   :  { %s1089_s29 = sshll.u32 %s1040_s28, 4  ;;  %s1091_s30 = sld [smem:[#allocation4 + $0x3]]  ;;  %s88_s29 = int_to_ptr.vmem [resolvable:$true] %s1089_s29 }
  0x12   :  { %s1103_s16 = scalar_lea.hbm %s1263_s2, 64 }
  0x13   :  { %s43_s6 = scalar_lea.hbm %s1263_s2, %s42_s0 }
  0x14   :  { %s51_s7 = sshll.u32 %s43_s6, 4  ;;  %s58_s10 = scalar_lea.hbm %s1263_s2, %s500_s24  ;;  %s52_s7 = int_to_ptr.hbm [resolvable:$true] %s51_s7 }
  0x15   :  { %s68_s11 = sshll.u32 %s58_s10, 4  ;;  %s588_s12 = sshra.s32 %s52_s7, 4  ;;  %s589_s12 = int_to_ptr.hbm [resolvable:$true] %s588_s12  ;;  %s69_s11 = int_to_ptr.hbm [resolvable:$true] %s68_s11 }
  0x16   :  { %s590_s13 = scalar_lea.hbm %s589_s12, 1  ;;  %p593_p1 = scmp.lt.s32.totalorder %s589_s12, %s1263_s2 }
  0x17   :  { %p591_p0 = scmp.ne.s32.totalorder %s589_s12, %s590_s13  ;;  %p594_p2 = scmp.lt.s32.totalorder %s1103_s16, %s590_s13 }
  0x19   :  { %p595_p3 = por %p594_p2, %p593_p1 }
  0x1b   :  { %p596_p4 = pnand %p595_p3, %p591_p0 }
  0x1d   :  { %599 = shalt.err (!%p596_p4)  }
  0x1e   :  { %56 = dma.hbm_to_vmem [thread:$0]  %s52_s7, 16, %s54_s1, [#allocation3] }
  0x1f   :  { %s75_s0 = scalar_lea.hbm %s1263_s2, %s1086_s27  ;;  %s612_s23 = sshra.s32 %s69_s11, 4  ;;  %s613_s23 = int_to_ptr.hbm [resolvable:$true] %s612_s23 }
  0x20   :  { %s614_s24 = scalar_lea.hbm %s613_s23, 1  ;;  %p617_p6 = scmp.lt.s32.totalorder %s613_s23, %s1263_s2 }
  0x21   :  { %p615_p5 = scmp.ne.s32.totalorder %s613_s23, %s614_s24  ;;  %p618_p7 = scmp.lt.s32.totalorder %s1103_s16, %s614_s24 }
  0x23   :  { %p619_p8 = por %p618_p7, %p617_p6 }
  0x25   :  { %p620_p9 = pnand %p619_p8, %p615_p5 }
  0x27   :  { %623 = shalt.err (!%p620_p9)  }
  0x28   :  { %73 = dma.hbm_to_vmem [thread:$0]  %s69_s11, 16, %s71_s26, [#allocation3 + $0x1] }
  0x29   :  { %s85_s1 = sshll.u32 %s75_s0, 4  ;;  %s92_s5 = scalar_lea.hbm %s1263_s2, %s1091_s30  ;;  %s86_s1 = int_to_ptr.hbm [resolvable:$true] %s85_s1 }
  0x2a   :  { %s102_s6 = sshll.u32 %s92_s5, 4  ;;  %s636_s7 = sshra.s32 %s86_s1, 4  ;;  %s637_s7 = int_to_ptr.hbm [resolvable:$true] %s636_s7  ;;  %s103_s6 = int_to_ptr.hbm [resolvable:$true] %s102_s6 }
  0x2b   :  { %s638_s8 = scalar_lea.hbm %s637_s7, 1  ;;  %p641_p11 = scmp.lt.s32.totalorder %s637_s7, %s1263_s2 }
  0x2c   :  { %p639_p10 = scmp.ne.s32.totalorder %s637_s7, %s638_s8  ;;  %p642_p12 = scmp.lt.s32.totalorder %s1103_s16, %s638_s8 }
  0x2e   :  { %p643_p13 = por %p642_p12, %p641_p11 }
  0x30   :  { %p644_p0 = pnand %p643_p13, %p639_p10 }
  0x32   :  { %647 = shalt.err (!%p644_p0)  }
  0x33   :  { %90 = dma.hbm_to_vmem [thread:$0]  %s86_s1, 16, %s88_s29, [#allocation3 + $0x2] }
  0x34   :  { %s1041_s26 = smov [#allocation2 + $0x3]   ;;  %s503_s11 = sld [smem:[#allocation4 + $0x4]] }
  0x35   :  { %s104_s30 = sshll.u32 %s1041_s26, 4  ;;  %s660_s12 = sshra.s32 %s103_s6, 4  ;;  %s105_s30 = int_to_ptr.vmem [resolvable:$true] %s104_s30  ;;  %s661_s12 = int_to_ptr.hbm [resolvable:$true] %s660_s12 }
  0x36   :  { %s662_s13 = scalar_lea.hbm %s661_s12, 1  ;;  %p665_p2 = scmp.lt.s32.totalorder %s661_s12, %s1263_s2 }
  0x37   :  { %p663_p1 = scmp.ne.s32.totalorder %s661_s12, %s662_s13  ;;  %p666_p3 = scmp.lt.s32.totalorder %s1103_s16, %s662_s13 }
  0x39   :  { %p667_p4 = por %p666_p3, %p665_p2 }
  0x3b   :  { %p668_p5 = pnand %p667_p4, %p663_p1 }
  0x3d   :  { %671 = shalt.err (!%p668_p5)  }
  0x3e   :  { %107 = dma.hbm_to_vmem [thread:$0]  %s103_s6, 16, %s105_s30, [#allocation3 + $0x3] }
  0x3f   :  { %s1042_s17 = smov [#allocation2 + $0x4]   ;;  %s504_s18 = sld [smem:[#allocation4 + $0x5]] }
  0x40   :  { %s121_s29 = sshll.u32 %s1042_s17, 4  ;;  %s1043_s19 = smov [#allocation2 + $0x5]   ;;  %s122_s29 = int_to_ptr.vmem [resolvable:$true] %s121_s29 }
  0x41   :  { %s1133_s20 = sshll.u32 %s1043_s19, 4  ;;  %s505_s0 = sld [smem:[#allocation4 + $0x6]]  ;;  %s139_s20 = int_to_ptr.vmem [resolvable:$true] %s1133_s20 }
  0x42   :  { %s109_s25 = scalar_lea.hbm %s1263_s2, %s503_s11  ;;  %s1044_s1 = smov [#allocation2 + $0x6]  }
  0x43   :  { %s119_s28 = sshll.u32 %s109_s25, 4  ;;  %s1139_s4 = sshll.u32 %s1044_s1, 4  ;;  %s120_s28 = int_to_ptr.hbm [resolvable:$true] %s119_s28  ;;  %s156_s4 = int_to_ptr.vmem [resolvable:$true] %s1139_s4 }
  0x44   :  { %s684_s27 = sshra.s32 %s120_s28, 4  ;;  %s685_s27 = int_to_ptr.hbm [resolvable:$true] %s684_s27 }
  0x45   :  { %s686_s5 = scalar_lea.hbm %s685_s27, 1  ;;  %p689_p7 = scmp.lt.s32.totalorder %s685_s27, %s1263_s2 }
  0x46   :  { %p687_p6 = scmp.ne.s32.totalorder %s685_s27, %s686_s5  ;;  %p690_p8 = scmp.lt.s32.totalorder %s1103_s16, %s686_s5 }
  0x48   :  { %p691_p9 = por %p690_p8, %p689_p7 }
  0x4a   :  { %p692_p10 = pnand %p691_p9, %p687_p6 }
  0x4c   :  { %695 = shalt.err (!%p692_p10)  }
  0x4d   :  { %124 = dma.hbm_to_vmem [thread:$0]  %s120_s28, 16, %s122_s29, [#allocation3 + $0x4] }
  0x4e   :  { %s126_s10 = scalar_lea.hbm %s1263_s2, %s504_s18  ;;  %s143_s12 = scalar_lea.hbm %s1263_s2, %s505_s0 }
  0x4f   :  { %s136_s26 = sshll.u32 %s126_s10, 4  ;;  %s153_s13 = sshll.u32 %s143_s12, 4  ;;  %s137_s26 = int_to_ptr.hbm [resolvable:$true] %s136_s26  ;;  %s154_s13 = int_to_ptr.hbm [resolvable:$true] %s153_s13 }
  0x50   :  { %s708_s14 = sshra.s32 %s137_s26, 4  ;;  %s709_s14 = int_to_ptr.hbm [resolvable:$true] %s708_s14 }
  0x51   :  { %s710_s15 = scalar_lea.hbm %s709_s14, 1  ;;  %p713_p12 = scmp.lt.s32.totalorder %s709_s14, %s1263_s2 }
  0x52   :  { %p711_p11 = scmp.ne.s32.totalorder %s709_s14, %s710_s15  ;;  %p714_p13 = scmp.lt.s32.totalorder %s1103_s16, %s710_s15 }
  0x54   :  { %p715_p0 = por %p714_p13, %p713_p12 }
  0x56   :  { %p716_p1 = pnand %p715_p0, %p711_p11 }
  0x58   :  { %719 = shalt.err (!%p716_p1)  }
  0x59   :  { %141 = dma.hbm_to_vmem [thread:$0]  %s137_s26, 16, %s139_s20, [#allocation3 + $0x5] }
  0x5a   :  { %s506_s18 = sld [smem:[#allocation4 + $0x7]]  ;;  %s732_s19 = sshra.s32 %s154_s13, 4  ;;  %s733_s19 = int_to_ptr.hbm [resolvable:$true] %s732_s19 }
  0x5b   :  { %s734_s0 = scalar_lea.hbm %s733_s19, 1  ;;  %p737_p3 = scmp.lt.s32.totalorder %s733_s19, %s1263_s2 }
  0x5c   :  { %p735_p2 = scmp.ne.s32.totalorder %s733_s19, %s734_s0  ;;  %p738_p4 = scmp.lt.s32.totalorder %s1103_s16, %s734_s0 }
  0x5e   :  { %p739_p5 = por %p738_p4, %p737_p3 }
  0x60   :  { %p740_p6 = pnand %p739_p5, %p735_p2 }
  0x62   :  { %743 = shalt.err (!%p740_p6)  }
  0x63   :  { %158 = dma.hbm_to_vmem [thread:$0]  %s154_s13, 16, %s156_s4, [#allocation3 + $0x6] }
  0x64   :  { %s507_s25 = sld [smem:[#allocation4 + $0x8]]  ;;  %s1045_s28 = smov [#allocation2 + $0x7]  }
  0x65   :  { %s172_s1 = sshll.u32 %s1045_s28, 4  ;;  %s1046_s20 = smov [#allocation2 + $0x8]   ;;  %s173_s1 = int_to_ptr.vmem [resolvable:$true] %s172_s1 }
  0x66   :  { %s1162_s27 = sshll.u32 %s1046_s20, 4  ;;  %s1165_s5 = sld [smem:[#allocation4 + $0x9]]  ;;  %s190_s27 = int_to_ptr.vmem [resolvable:$true] %s1162_s27 }
  0x67   :  { %s160_s8 = scalar_lea.hbm %s1263_s2, %s506_s18  ;;  %s1047_s10 = smov [#allocation2 + $0x9]  }
  0x68   :  { %s170_s9 = sshll.u32 %s160_s8, 4  ;;  %s1170_s26 = sshll.u32 %s1047_s10, 4  ;;  %s171_s9 = int_to_ptr.hbm [resolvable:$true] %s170_s9  ;;  %s207_s26 = int_to_ptr.vmem [resolvable:$true] %s1170_s26 }
  0x69   :  { %s756_s12 = sshra.s32 %s171_s9, 4  ;;  %s757_s12 = int_to_ptr.hbm [resolvable:$true] %s756_s12 }
  0x6a   :  { %s177_s11 = scalar_lea.hbm %s1263_s2, %s507_s25  ;;  %s758_s13 = scalar_lea.hbm %s757_s12, 1 }
  0x6b   :  { %p759_p7 = scmp.ne.s32.totalorder %s757_s12, %s758_s13  ;;  %p761_p8 = scmp.lt.s32.totalorder %s757_s12, %s1263_s2 }
  0x6c   :  { %p762_p9 = scmp.lt.s32.totalorder %s1103_s16, %s758_s13 }
  0x6e   :  { %p763_p10 = por %p762_p9, %p761_p8 }
  0x70   :  { %p764_p11 = pnand %p763_p10, %p759_p7 }
  0x72   :  { %767 = shalt.err (!%p764_p11)  }
  0x73   :  { %175 = dma.hbm_to_vmem [thread:$0]  %s171_s9, 16, %s173_s1, [#allocation3 + $0x7] }
  0x74   :  { %s187_s17 = sshll.u32 %s177_s11, 4  ;;  %s194_s19 = scalar_lea.hbm %s1263_s2, %s1165_s5  ;;  %s188_s17 = int_to_ptr.hbm [resolvable:$true] %s187_s17 }
  0x75   :  { %s780_s0 = sshra.s32 %s188_s17, 4  ;;  %s781_s0 = int_to_ptr.hbm [resolvable:$true] %s780_s0 }
  0x76   :  { %s782_s23 = scalar_lea.hbm %s781_s0, 1  ;;  %p785_p13 = scmp.lt.s32.totalorder %s781_s0, %s1263_s2 }
  0x77   :  { %p783_p12 = scmp.ne.s32.totalorder %s781_s0, %s782_s23  ;;  %p786_p0 = scmp.lt.s32.totalorder %s1103_s16, %s782_s23 }
  0x79   :  { %p787_p1 = por %p786_p0, %p785_p13 }
  0x7b   :  { %p788_p2 = pnand %p787_p1, %p783_p12 }
  0x7d   :  { %791 = shalt.err (!%p788_p2)  }
  0x7e   :  { %192 = dma.hbm_to_vmem [thread:$0]  %s188_s17, 16, %s190_s27, [#allocation3 + $0x8] }
  0x7f   :  { %s204_s28 = sshll.u32 %s194_s19, 4  ;;  %s509_s1 = sld [smem:[#allocation4 + $0xa]]  ;;  %s205_s28 = int_to_ptr.hbm [resolvable:$true] %s204_s28 }
  0x80   :  { %s804_s20 = sshra.s32 %s205_s28, 4  ;;  %s805_s20 = int_to_ptr.hbm [resolvable:$true] %s804_s20 }
  0x81   :  { %s806_s5 = scalar_lea.hbm %s805_s20, 1  ;;  %p809_p4 = scmp.lt.s32.totalorder %s805_s20, %s1263_s2 }
  0x82   :  { %p807_p3 = scmp.ne.s32.totalorder %s805_s20, %s806_s5  ;;  %p810_p5 = scmp.lt.s32.totalorder %s1103_s16, %s806_s5 }
  0x84   :  { %p811_p6 = por %p810_p5, %p809_p4 }
  0x86   :  { %p812_p7 = pnand %p811_p6, %p807_p3 }
  0x88   :  { %815 = shalt.err (!%p812_p7)  }
  0x89   :  { %209 = dma.hbm_to_vmem [thread:$0]  %s205_s28, 16, %s207_s26, [#allocation3 + $0x9] }
  0x8a   :  { %s1048_s8 = smov [#allocation2 + $0xa]   ;;  %s510_s10 = sld [smem:[#allocation4 + $0xb]] }
  0x8b   :  { %s223_s9 = sshll.u32 %s1048_s8, 4  ;;  %s1049_s27 = smov [#allocation2 + $0xb]   ;;  %s224_s9 = int_to_ptr.vmem [resolvable:$true] %s223_s9 }
  0x8c   :  { %s1194_s4 = sshll.u32 %s1049_s27, 4  ;;  %s511_s30 = sld [smem:[#allocation4 + $0xc]]  ;;  %s241_s4 = int_to_ptr.vmem [resolvable:$true] %s1194_s4 }
  0x8d   :  { %s211_s13 = scalar_lea.hbm %s1263_s2, %s509_s1  ;;  %s1050_s15 = smov [#allocation2 + $0xc]  }
  0x8e   :  { %s221_s14 = sshll.u32 %s211_s13, 4  ;;  %s1200_s17 = sshll.u32 %s1050_s15, 4  ;;  %s222_s14 = int_to_ptr.hbm [resolvable:$true] %s221_s14  ;;  %s258_s17 = int_to_ptr.vmem [resolvable:$true] %s1200_s17 }
  0x8f   :  { %s828_s26 = sshra.s32 %s222_s14, 4  ;;  %s829_s26 = int_to_ptr.hbm [resolvable:$true] %s828_s26 }
  0x90   :  { %s830_s29 = scalar_lea.hbm %s829_s26, 1  ;;  %p833_p9 = scmp.lt.s32.totalorder %s829_s26, %s1263_s2 }
  0x91   :  { %p831_p8 = scmp.ne.s32.totalorder %s829_s26, %s830_s29  ;;  %p834_p10 = scmp.lt.s32.totalorder %s1103_s16, %s830_s29 }
  0x93   :  { %p835_p11 = por %p834_p10, %p833_p9 }
  0x95   :  { %p836_p12 = pnand %p835_p11, %p831_p8 }
  0x97   :  { %839 = shalt.err (!%p836_p12)  }
  0x98   :  { %226 = dma.hbm_to_vmem [thread:$0]  %s222_s14, 16, %s224_s9, [#allocation3 + $0xa] }
  0x99   :  { %s228_s24 = scalar_lea.hbm %s1263_s2, %s510_s10  ;;  %s245_s20 = scalar_lea.hbm %s1263_s2, %s511_s30 }
  0x9a   :  { %s238_s25 = sshll.u32 %s228_s24, 4  ;;  %s255_s5 = sshll.u32 %s245_s20, 4  ;;  %s239_s25 = int_to_ptr.hbm [resolvable:$true] %s238_s25  ;;  %s256_s5 = int_to_ptr.hbm [resolvable:$true] %s255_s5 }
  0x9b   :  { %s852_s6 = sshra.s32 %s239_s25, 4  ;;  %s853_s6 = int_to_ptr.hbm [resolvable:$true] %s852_s6 }
  0x9c   :  { %s854_s7 = scalar_lea.hbm %s853_s6, 1  ;;  %p857_p0 = scmp.lt.s32.totalorder %s853_s6, %s1263_s2 }
  0x9d   :  { %p855_p13 = scmp.ne.s32.totalorder %s853_s6, %s854_s7  ;;  %p858_p1 = scmp.lt.s32.totalorder %s1103_s16, %s854_s7 }
  0x9f   :  { %p859_p2 = por %p858_p1, %p857_p0 }
  0xa1   :  { %p860_p3 = pnand %p859_p2, %p855_p13 }
  0xa3   :  { %863 = shalt.err (!%p860_p3)  }
  0xa4   :  { %243 = dma.hbm_to_vmem [thread:$0]  %s239_s25, 16, %s241_s4, [#allocation3 + $0xb] }
  0xa5   :  { %s512_s10 = sld [smem:[#allocation4 + $0xd]]  ;;  %s876_s27 = sshra.s32 %s256_s5, 4  ;;  %s877_s27 = int_to_ptr.hbm [resolvable:$true] %s876_s27 }
  0xa6   :  { %s878_s30 = scalar_lea.hbm %s877_s27, 1  ;;  %p881_p5 = scmp.lt.s32.totalorder %s877_s27, %s1263_s2 }
  0xa7   :  { %p879_p4 = scmp.ne.s32.totalorder %s877_s27, %s878_s30  ;;  %p882_p6 = scmp.lt.s32.totalorder %s1103_s16, %s878_s30 }
  0xa9   :  { %p883_p7 = por %p882_p6, %p881_p5 }
  0xab   :  { %p884_p8 = pnand %p883_p7, %p879_p4 }
  0xad   :  { %887 = shalt.err (!%p884_p8)  }
  0xae   :  { %260 = dma.hbm_to_vmem [thread:$0]  %s256_s5, 16, %s258_s17, [#allocation3 + $0xc] }
  0xaf   :  { %s513_s13 = sld [smem:[#allocation4 + $0xe]]  ;;  %s1051_s14 = smov [#allocation2 + $0xd]  }
  0xb0   :  { %s274_s15 = sshll.u32 %s1051_s14, 4  ;;  %s1052_s4 = smov [#allocation2 + $0xe]   ;;  %s275_s15 = int_to_ptr.vmem [resolvable:$true] %s274_s15 }
  0xb1   :  { %s1223_s26 = sshll.u32 %s1052_s4, 4  ;;  %s1226_s29 = sld [smem:[#allocation4 + $0xf]]  ;;  %s292_s26 = int_to_ptr.vmem [resolvable:$true] %s1223_s26 }
  0xb2   :  { %s262_s0 = scalar_lea.hbm %s1263_s2, %s512_s10  ;;  %s1053_s24 = smov [#allocation2 + $0xf]  }
  0xb3   :  { %s272_s23 = sshll.u32 %s262_s0, 4  ;;  %s1231_s25 = sshll.u32 %s1053_s24, 4  ;;  %s273_s23 = int_to_ptr.hbm [resolvable:$true] %s272_s23  ;;  %s309_s25 = int_to_ptr.vmem [resolvable:$true] %s1231_s25 }
  0xb4   :  { %s900_s20 = sshra.s32 %s273_s23, 4  ;;  %s901_s20 = int_to_ptr.hbm [resolvable:$true] %s900_s20 }
  0xb5   :  { %s279_s1 = scalar_lea.hbm %s1263_s2, %s513_s13  ;;  %s902_s5 = scalar_lea.hbm %s901_s20, 1 }
  0xb6   :  { %p903_p9 = scmp.ne.s32.totalorder %s901_s20, %s902_s5  ;;  %p905_p10 = scmp.lt.s32.totalorder %s901_s20, %s1263_s2 }
  0xb7   :  { %p906_p11 = scmp.lt.s32.totalorder %s1103_s16, %s902_s5 }
  0xb9   :  { %p907_p12 = por %p906_p11, %p905_p10 }
  0xbb   :  { %p908_p13 = pnand %p907_p12, %p903_p9 }
  0xbd   :  { %911 = shalt.err (!%p908_p13)  }
  0xbe   :  { %277 = dma.hbm_to_vmem [thread:$0]  %s273_s23, 16, %s275_s15, [#allocation3 + $0xd] }
  0xbf   :  { %s289_s8 = sshll.u32 %s279_s1, 4  ;;  %s296_s27 = scalar_lea.hbm %s1263_s2, %s1226_s29  ;;  %s290_s8 = int_to_ptr.hbm [resolvable:$true] %s289_s8 }
  0xc0   :  { %s924_s30 = sshra.s32 %s290_s8, 4  ;;  %s925_s30 = int_to_ptr.hbm [resolvable:$true] %s924_s30 }
  0xc1   :  { %s926_s11 = scalar_lea.hbm %s925_s30, 1  ;;  %p929_p1 = scmp.lt.s32.totalorder %s925_s30, %s1263_s2 }
  0xc2   :  { %p927_p0 = scmp.ne.s32.totalorder %s925_s30, %s926_s11  ;;  %p930_p2 = scmp.lt.s32.totalorder %s1103_s16, %s926_s11 }
  0xc4   :  { %p931_p3 = por %p930_p2, %p929_p1 }
  0xc6   :  { %p932_p4 = pnand %p931_p3, %p927_p0 }
  0xc8   :  { %935 = shalt.err (!%p932_p4)  }
  0xc9   :  { %294 = dma.hbm_to_vmem [thread:$0]  %s290_s8, 16, %s292_s26, [#allocation3 + $0xe] }
  0xca   :  { %s306_s14 = sshll.u32 %s296_s27, 4  ;;  %s307_s14 = int_to_ptr.hbm [resolvable:$true] %s306_s14 }
  0xcb   :  { %s948_s15 = sshra.s32 %s307_s14, 4  ;;  %s949_s15 = int_to_ptr.hbm [resolvable:$true] %s948_s15 }
  0xcc   :  { %s950_s4 = scalar_lea.hbm %s949_s15, 1  ;;  %p953_p6 = scmp.lt.s32.totalorder %s949_s15, %s1263_s2 }
  0xcd   :  { %p951_p5 = scmp.ne.s32.totalorder %s949_s15, %s950_s4  ;;  %p954_p7 = scmp.lt.s32.totalorder %s1103_s16, %s950_s4 }
  0xcf   :  { %p955_p8 = por %p954_p7, %p953_p6 }
  0xd1   :  { %p956_p9 = pnand %p955_p8, %p951_p5 }
  0xd3   :  { %959 = shalt.err (!%p956_p9)  }
  0xd4   :  { %311 = dma.hbm_to_vmem [thread:$0]  %s307_s14, 16, %s309_s25, [#allocation3 + $0xf] }
  0xd5   :  { %1000 = dma.done.wait [#allocation3], 16 }
  0xd6   :  { %1001 = vsyncadd [#allocation3], 4294967280 }
  0xd7   :  { %1002 = dma.done.wait [#allocation3 + $0x1], 16 }
  0xd8   :  { %1003 = vsyncadd [#allocation3 + $0x1], 4294967280 }
  0xd9   :  { %1004 = dma.done.wait [#allocation3 + $0x2], 16 }
  0xda   :  { %1005 = vsyncadd [#allocation3 + $0x2], 4294967280 }
  0xdb   :  { %1006 = dma.done.wait [#allocation3 + $0x3], 16 }
  0xdc   :  { %1007 = vsyncadd [#allocation3 + $0x3], 4294967280 }
  0xdd   :  { %1008 = dma.done.wait [#allocation3 + $0x4], 16 }
  0xde   :  { %1009 = vsyncadd [#allocation3 + $0x4], 4294967280 }
  0xdf   :  { %1010 = dma.done.wait [#allocation3 + $0x5], 16 }
  0xe0   :  { %1011 = vsyncadd [#allocation3 + $0x5], 4294967280 }
  0xe1   :  { %1012 = dma.done.wait [#allocation3 + $0x6], 16 }
  0xe2   :  { %1013 = vsyncadd [#allocation3 + $0x6], 4294967280 }
  0xe3   :  { %1014 = dma.done.wait [#allocation3 + $0x7], 16 }
  0xe4   :  { %1015 = vsyncadd [#allocation3 + $0x7], 4294967280 }
  0xe5   :  { %1016 = dma.done.wait [#allocation3 + $0x8], 16 }
  0xe6   :  { %1017 = vsyncadd [#allocation3 + $0x8], 4294967280 }
  0xe7   :  { %1018 = dma.done.wait [#allocation3 + $0x9], 16 }
  0xe8   :  { %1019 = vsyncadd [#allocation3 + $0x9], 4294967280 }
  0xe9   :  { %1020 = dma.done.wait [#allocation3 + $0xa], 16 }
  0xea   :  { %1021 = vsyncadd [#allocation3 + $0xa], 4294967280 }
  0xeb   :  { %1022 = dma.done.wait [#allocation3 + $0xb], 16 }
  0xec   :  { %1023 = vsyncadd [#allocation3 + $0xb], 4294967280 }
  0xed   :  { %1024 = dma.done.wait [#allocation3 + $0xc], 16 }
  0xee   :  { %1025 = vsyncadd [#allocation3 + $0xc], 4294967280 }
  0xef   :  { %1026 = dma.done.wait [#allocation3 + $0xd], 16 }
  0xf0   :  { %1027 = vsyncadd [#allocation3 + $0xd], 4294967280 }
  0xf1   :  { %1028 = dma.done.wait [#allocation3 + $0xe], 16 }
  0xf2   :  { %1029 = vsyncadd [#allocation3 + $0xe], 4294967280 }
  0xf3   :  { %1030 = dma.done.wait [#allocation3 + $0xf], 16 }
  0xf4   :  { %1031 = vsyncadd [#allocation3 + $0xf], 4294967280  ;;  %s1054_s2 = smov [#allocation9]   ;;  %s359_s0 = sshll.u32 %s1264_s3, 4  ;;  %v345_v0 = vld [vmem:[#allocation2] sm:$0xff]  ;;  %v347_v1 = vld [vmem:[#allocation8] sm:$0xff]  ;;  %s360_s0 = int_to_ptr.hbm [resolvable:$true] %s359_s0 }
  0xf5   :  { %s357_s16 = sshll.u32 %s1054_s2, 4  ;;  %v346_v2 = vld [vmem:[#allocation2 + $0x8] sm:$0xff]  ;;  %v349_v3 = vadd.f32 %v347_v1, %v345_v0  ;;  %v348_v4 = vld [vmem:[#allocation8 + $0x8] sm:$0xff]  ;;  %s358_s16 = int_to_ptr.vmem [resolvable:$true] %s357_s16 }
  0xf6   :  { %v350_v5 = vadd.f32 %v348_v4, %v346_v2 }
  0xf7   :  { %351 = vst [vmem:[#allocation9] sm:$0xff] %v349_v3 }
  0xf8   :  { %352 = vst [vmem:[#allocation9 + $0x8] sm:$0xff] %v350_v5 }
  0xf9   :  { %365 = dma.vmem_to_hbm [thread:$0]  %s358_s16, 256, %s360_s0, [#allocation6], %s1036_s21, %s1036_s21, %s1037_s22  }
  0xfa   :  { %1032 = dma.done.wait [#allocation6], 256  }
  0xfb   :  { %1033 = vsyncadd [#allocation6], 4294967040 }
  0xfc   :  { %370 = vsyncpa [#allocation5], 1 }
  0xfd   :  { %371 = vsyncpa [#allocation6], 1 }
  0xfe   :  { %372 = vsyncpa [#allocation7], 1 }
  0xff   :  { %373 = vsyncmov [#allocation3] }
 0x102   :  { %s374_s3 = vpop.sfrf %373 }
 0x103   :  { %p515_p10 = scmp.ne.s32.totalorder %s374_s3, 0 }
 0x105   :  { %378 = shalt.err (%p515_p10)  }
 0x106   :  { %380 = vsyncmov [#allocation3 + $0x1] }
 0x109   :  { %s381_s23 = vpop.sfrf %380 }
 0x10a   :  { %p516_p11 = scmp.ne.s32.totalorder %s381_s23, 0 }
 0x10c   :  { %385 = shalt.err (%p516_p11)  }
 0x10d   :  { %387 = vsyncmov [#allocation3 + $0x2] }
 0x110   :  { %s388_s24 = vpop.sfrf %387 }
 0x111   :  { %p517_p12 = scmp.ne.s32.totalorder %s388_s24, 0 }
 0x113   :  { %392 = shalt.err (%p517_p12)  }
 0x114   :  { %394 = vsyncmov [#allocation3 + $0x3] }
 0x117   :  { %s395_s25 = vpop.sfrf %394 }
 0x118   :  { %p518_p13 = scmp.ne.s32.totalorder %s395_s25, 0 }
 0x11a   :  { %399 = shalt.err (%p518_p13)  }
 0x11b   :  { %401 = vsyncmov [#allocation3 + $0x4] }
 0x11e   :  { %s402_s21 = vpop.sfrf %401 }
 0x11f   :  { %p519_p0 = scmp.ne.s32.totalorder %s402_s21, 0 }
 0x121   :  { %406 = shalt.err (%p519_p0)  }
 0x122   :  { %408 = vsyncmov [#allocation3 + $0x5] }
 0x125   :  { %s409_s22 = vpop.sfrf %408 }
 0x126   :  { %p520_p1 = scmp.ne.s32.totalorder %s409_s22, 0 }
 0x128   :  { %413 = shalt.err (%p520_p1)  }
 0x129   :  { %415 = vsyncmov [#allocation3 + $0x6] }
 0x12c   :  { %s416_s17 = vpop.sfrf %415 }
 0x12d   :  { %p521_p2 = scmp.ne.s32.totalorder %s416_s17, 0 }
 0x12f   :  { %420 = shalt.err (%p521_p2)  }
 0x130   :  { %422 = vsyncmov [#allocation3 + $0x7] }
 0x133   :  { %s423_s28 = vpop.sfrf %422 }
 0x134   :  { %p522_p3 = scmp.ne.s32.totalorder %s423_s28, 0 }
 0x136   :  { %427 = shalt.err (%p522_p3)  }
 0x137   :  { %429 = vsyncmov [#allocation3 + $0x8] }
 0x13a   :  { %s430_s1 = vpop.sfrf %429 }
 0x13b   :  { %p523_p4 = scmp.ne.s32.totalorder %s430_s1, 0 }
 0x13d   :  { %434 = shalt.err (%p523_p4)  }
 0x13e   :  { %436 = vsyncmov [#allocation3 + $0x9] }
 0x141   :  { %s437_s20 = vpop.sfrf %436 }
 0x142   :  { %p524_p5 = scmp.ne.s32.totalorder %s437_s20, 0 }
 0x144   :  { %441 = shalt.err (%p524_p5)  }
 0x145   :  { %443 = vsyncmov [#allocation3 + $0xa] }
 0x148   :  { %s444_s5 = vpop.sfrf %443 }
 0x149   :  { %p525_p6 = scmp.ne.s32.totalorder %s444_s5, 0 }
 0x14b   :  { %448 = shalt.err (%p525_p6)  }
 0x14c   :  { %450 = vsyncmov [#allocation3 + $0xb] }
 0x14f   :  { %s451_s6 = vpop.sfrf %450 }
 0x150   :  { %p526_p7 = scmp.ne.s32.totalorder %s451_s6, 0 }
 0x152   :  { %455 = shalt.err (%p526_p7)  }
 0x153   :  { %457 = vsyncmov [#allocation3 + $0xc] }
 0x156   :  { %s458_s7 = vpop.sfrf %457 }
 0x157   :  { %p527_p8 = scmp.ne.s32.totalorder %s458_s7, 0 }
 0x159   :  { %462 = shalt.err (%p527_p8)  }
 0x15a   :  { %464 = vsyncmov [#allocation3 + $0xd] }
 0x15d   :  { %s465_s8 = vpop.sfrf %464 }
 0x15e   :  { %p528_p9 = scmp.ne.s32.totalorder %s465_s8, 0 }
 0x160   :  { %469 = shalt.err (%p528_p9)  }
 0x161   :  { %471 = vsyncmov [#allocation3 + $0xe] }
 0x164   :  { %s472_s9 = vpop.sfrf %471 }
 0x165   :  { %p529_p10 = scmp.ne.s32.totalorder %s472_s9, 0 }
 0x167   :  { %476 = shalt.err (%p529_p10)  }
 0x168   :  { %478 = vsyncmov [#allocation3 + $0xf] }
 0x16b   :  { %s479_s10 = vpop.sfrf %478 }
 0x16c   :  { %p530_p11 = scmp.ne.s32.totalorder %s479_s10, 0 }
 0x16e   :  { %483 = shalt.err (%p530_p11)  }

</bundles_post_ra>
